<compile_context>
chip_gen: v6e
topology: v6e:2x2x1
jax: 0.10.0
libtpu: 0.0.40
codegen_flags: <defaults>
</compile_context>

<pallas_src>
import jax
import jax.numpy as jnp
from jax.experimental import pallas as pl
from jax.experimental.pallas import tpu as pltpu

BN_EPS = 1e-5  # nn.BatchNorm2d default


def att_pooling_kernel(x_ref, wfc_ref, wmlp_ref, bias_ref, o_ref, att_ref):
    # x_ref block: (1, K, C_in, TN)  -- N on lanes, C_in on sublanes, K unrolled.
    # att_ref:     (K, C_in, TN) f32 VMEM scratch caching the fc activations.
    K = x_ref.shape[1]

    wfc = wfc_ref[...]      # (C_in, C_in) bf16  [out_ch, in_ch] -- contracts directly
    wmlp = wmlp_ref[...]    # (d_out, C_in) f32, BatchNorm folded in
    bias = bias_ref[...]    # (d_out, 1)    f32, BatchNorm folded in

    # --- pass 1: bf16 MXU fc activation per neighbor, cached; running max over K ---
    # (binding unit here is MXU push cadence; caching avoids recomputing the
    #  K matmuls in pass 2, and bf16 operands keep each matmul single-pass)
    a = jnp.dot(wfc, x_ref[0, 0].astype(jnp.bfloat16),
                preferred_element_type=jnp.float32)              # (C_in, TN)
    att_ref[0] = a
    m = a
    for k in range(1, K):
        a = jnp.dot(wfc, x_ref[0, k].astype(jnp.bfloat16),
                    preferred_element_type=jnp.float32)
        att_ref[k] = a
        m = jnp.maximum(m, a)

    # --- pass 2: softmax exp-sum fused with the attention-weighted feature sum ---
    denom = jnp.zeros_like(m)
    acc = jnp.zeros_like(m)
    for k in range(K):
        e = jnp.exp(att_ref[k] - m)                              # (C_in, TN)
        denom = denom + e
        acc = acc + x_ref[0, k].astype(jnp.float32) * e
    # denom >= 1 (max-subtracted softmax); EUP fast-path reciprocal is free
    # in its own VLIW slot and well within the test tolerance.
    f_agg = acc * pl.reciprocal(denom, approx=True)              # (C_in, TN)

    # --- mlp 1x1 conv with BatchNorm folded in, then ReLU (kept f32) ---
    y = jnp.dot(wmlp, f_agg, preferred_element_type=jnp.float32) + bias   # (d_out, TN)
    o_ref[0] = jnp.maximum(y, 0.0).astype(o_ref.dtype)


def att_pooling(x_nchw, wfc, wmlp, gamma, beta, mean, var, *, tile_n=None):
    """Forward pass of Att_pooling.

    x_nchw: (B, C_in, N, K) in PyTorch NCHW layout. N must be a multiple of 128.
    Returns (B, d_out, N, 1), matching the PyTorch module's output layout.
    Call this under jax.jit so the layout transpose / BN fold fuse with the
    producing op instead of being a standalone HBM round trip.
    """
    B, C, N, K = x_nchw.shape
    d_out = wmlp.shape[0]
    assert N % 128 == 0, "N must be a multiple of 128 (lane dimension)"

    # Layout flip: put N on lanes -> (B, K, C_in, N).
    # TODO(synk): ideally the upstream op should emit (B, K, C_in, N) directly.
    x_kcn = jnp.transpose(x_nchw, (0, 3, 1, 2))

    # Fold eval-mode BatchNorm into the mlp conv weight/bias.
    scale = gamma * jax.lax.rsqrt(var + BN_EPS)                  # (d_out,)
    wmlp_eff = (wmlp * scale[:, None]).astype(jnp.float32)       # (d_out, C_in)
    bias_eff = (beta - mean * scale).reshape(d_out, 1).astype(jnp.float32)

    # Attention-matmul weight in bf16 (native single-pass MXU path).
    wfc_bf16 = wfc.astype(jnp.bfloat16)

    # Lane-dense N tile, capped at ~1 MiB of input per grid step. Keeps the
    # accumulators near-register-resident (v5e: single vst slot) and the total
    # per-step VMEM (2x input + f32 activation cache + 2x output) a few MiB.
    if tile_n is None:
        itemsize = jnp.dtype(x_nchw.dtype).itemsize
        budget = 1 * 1024 * 1024
        tile_n = 128
        for cand in (2048, 1024, 512, 256, 128):
            if N % cand == 0 and K * C * cand * itemsize <= budget:
                tile_n = cand
                break
        # Give v7x's two TensorCores at least 2 programs when possible.
        while tile_n > 128 and B * (N // tile_n) < 2:
            tile_n //= 2
    assert N % tile_n == 0 and tile_n % 128 == 0, "N must tile in multiples of 128"

    out = pl.pallas_call(
        att_pooling_kernel,
        out_shape=jax.ShapeDtypeStruct((B, d_out, N), x_nchw.dtype),
        grid_spec=pltpu.PrefetchScalarGridSpec(
            num_scalar_prefetch=0,
            grid=(B, N // tile_n),
            in_specs=[
                pl.BlockSpec((1, K, C, tile_n), lambda b, n: (b, 0, 0, n)),  # features
                pl.BlockSpec((C, C), lambda b, n: (0, 0)),                   # fc weight (bf16)
                pl.BlockSpec((d_out, C), lambda b, n: (0, 0)),               # mlp weight (BN-folded)
                pl.BlockSpec((d_out, 1), lambda b, n: (0, 0)),               # mlp bias (BN-folded)
            ],
            out_specs=pl.BlockSpec((1, d_out, tile_n), lambda b, n: (b, 0, n)),
            scratch_shapes=[pltpu.VMEM((K, C, tile_n), jnp.float32)],        # fc activation cache
        ),
        compiler_params=pltpu.CompilerParams(
            dimension_semantics=("parallel", "parallel"),
            vmem_limit_bytes=32 * 1024 * 1024,
        ),
    )(x_kcn, wfc_bf16, wmlp_eff, bias_eff)

    # (B, d_out, N) -> (B, d_out, N, 1), i.e. PyTorch's keepdim output.
    return out[..., None]


def ref_forward_nchw(x_nchw, wfc, wmlp, gamma, beta, mean, var):
    """Pure-JAX f32 reference mirroring the PyTorch NCHW module exactly."""
    att = jnp.einsum('dc,bcnk->bdnk', wfc, x_nchw)
    scores = jax.nn.softmax(att, axis=3)
    f_agg = jnp.sum(x_nchw * scores, axis=3, keepdims=True)          # (B, C_in, N, 1)
    y = jnp.einsum('dc,bcnk->bdnk', wmlp, f_agg)                     # (B, d_out, N, 1)
    inv = (gamma * jax.lax.rsqrt(var + BN_EPS))[None, :, None, None]
    y = (y - mean[None, :, None, None]) * inv + beta[None, :, None, None]
    return jnp.maximum(y, 0.0)


if __name__ == "__main__":
    # Small but lane-friendly shapes: N is a multiple of 128.
    B, d_in, N, K, d_out = 2, 16, 256, 16, 32

    key = jax.random.PRNGKey(0)
    kx, kfc, kmlp, kg, kb, km, kv = jax.random.split(key, 7)

    # feature_set in PyTorch NCHW layout: (B, d_in, N, K)
    x_nchw = jax.random.normal(kx, (B, d_in, N, K), dtype=jnp.float32)

    # Parameters (deterministic synthetic init; no checkpoint loading)
    wfc = 0.1 * jax.random.normal(kfc, (d_in, d_in), dtype=jnp.float32)      # fc weight
    wmlp = 0.1 * jax.random.normal(kmlp, (d_out, d_in), dtype=jnp.float32)   # mlp conv weight
    gamma = 1.0 + 0.1 * jax.random.normal(kg, (d_out,), dtype=jnp.float32)   # BN weight
    beta = 0.1 * jax.random.normal(kb, (d_out,), dtype=jnp.float32)          # BN bias
    mean = 0.1 * jax.random.normal(km, (d_out,), dtype=jnp.float32)          # BN running_mean
    var = jnp.abs(1.0 + 0.1 * jax.random.normal(kv, (d_out,), dtype=jnp.float32))  # running_var

    # jit the whole wrapper so the layout transpose + BN fold fuse with the
    # surrounding graph rather than running as standalone HBM round trips.
    att_pooling_jit = jax.jit(att_pooling)
    out = att_pooling_jit(x_nchw, wfc, wmlp, gamma, beta, mean, var)   # (B, d_out, N, 1)
    out = jax.block_until_ready(out)

    # Sanity check against the pure-JAX f32 reference. Tolerance is loosened
    # (vs bit-tight f32) because the attention logits use the native bf16 MXU
    # path and the softmax denominator uses the EUP approx reciprocal.
    ref = ref_forward_nchw(x_nchw, wfc, wmlp, gamma, beta, mean, var)  # (B, d_out, N, 1)
    assert out.shape == ref.shape, (out.shape, ref.shape)
    assert jnp.allclose(out, ref, rtol=2e-2, atol=2e-2), "mismatch vs reference"

    print("KERNEL_OK")
</pallas_src>

<mosaic_0001>
module attributes {stable_mosaic.version = 11 : i64} {
  func.func @att_pooling_kernel(%arg0: i32, %arg1: i32, %arg2: memref<1x16x16x256xf32, #tpu.memory_space<vmem>>, %arg3: memref<16x16xbf16, #tpu.memory_space<vmem>>, %arg4: memref<32x16xf32, #tpu.memory_space<vmem>>, %arg5: memref<32x1xf32, #tpu.memory_space<vmem>>, %arg6: memref<1x32x256xf32, #tpu.memory_space<vmem>>, %arg7: memref<16x16x256xf32, #tpu.memory_space<vmem>>) attributes {dimension_semantics = [#tpu.dimension_semantics<parallel>, #tpu.dimension_semantics<parallel>], iteration_bounds = array<i64: 2, 1>, scalar_prefetch = 0 : i64, scratch_operands = 1 : i64, tpu.core_type = #tpu.core_type<tc>, window_params = [{transform_indices = @transform_0, window_bounds = array<i64: 1, 16, 16, 256>}, {pipeline_mode = #tpu.pipeline_mode<synchronous>, transform_indices = @transform_1, window_bounds = array<i64: 16, 16>}, {pipeline_mode = #tpu.pipeline_mode<synchronous>, transform_indices = @transform_2, window_bounds = array<i64: 32, 16>}, {pipeline_mode = #tpu.pipeline_mode<synchronous>, transform_indices = @transform_3, window_bounds = array<i64: 32, 1>}, {transform_indices = @transform_4, window_bounds = array<i64: 1, 32, 256>}]} {
    %c0 = arith.constant 0 : index
    %c0_0 = arith.constant 0 : index
    %0 = vector.load %arg3[%c0, %c0_0] : memref<16x16xbf16, #tpu.memory_space<vmem>>, vector<16x16xbf16>
    %c0_1 = arith.constant 0 : index
    %c0_2 = arith.constant 0 : index
    %1 = vector.load %arg4[%c0_1, %c0_2] : memref<32x16xf32, #tpu.memory_space<vmem>>, vector<32x16xf32>
    %c0_3 = arith.constant 0 : index
    %c0_4 = arith.constant 0 : index
    %2 = vector.load %arg5[%c0_3, %c0_4] : memref<32x1xf32, #tpu.memory_space<vmem>>, vector<32x1xf32>
    %c0_5 = arith.constant 0 : index
    %c0_6 = arith.constant 0 : index
    %c0_7 = arith.constant 0 : index
    %c0_8 = arith.constant 0 : index
    %3 = vector.load %arg2[%c0_5, %c0_6, %c0_7, %c0_8] : memref<1x16x16x256xf32, #tpu.memory_space<vmem>>, vector<1x1x16x256xf32>
    %4 = vector.shape_cast %3 : vector<1x1x16x256xf32> to vector<16x256xf32>
    %5 = arith.truncf %4 : vector<16x256xf32> to vector<16x256xbf16>
    %cst = arith.constant dense<0.000000e+00> : vector<16x256xf32>
    %6 = tpu.matmul %0, %5, %cst {dimension_numbers = #tpu.dot_dimension_numbers<[1], [0], [0], [1], [0, 0, 1, 1], [], []>} : vector<16x16xbf16>, vector<16x256xbf16>, vector<16x256xf32> -> vector<16x256xf32>
    %c0_9 = arith.constant 0 : index
    %c0_10 = arith.constant 0 : index
    %c0_11 = arith.constant 0 : index
    %7 = vector.load %arg7[%c0_9, %c0_10, %c0_11] : memref<16x16x256xf32, #tpu.memory_space<vmem>>, vector<1x16x256xf32>
    %8 = vector.shape_cast %7 : vector<1x16x256xf32> to vector<16x256xf32>
    %9 = vector.shape_cast %6 : vector<16x256xf32> to vector<1x16x256xf32>
    tpu.vector_store %arg7[%c0_9, %c0_10, %c0_11], %9 {strides = array<i32>} : memref<16x16x256xf32, #tpu.memory_space<vmem>>, vector<1x16x256xf32>,
    %c0_12 = arith.constant 0 : index
    %c1 = arith.constant 1 : index
    %c0_13 = arith.constant 0 : index
    %c0_14 = arith.constant 0 : index
    %10 = vector.load %arg2[%c0_12, %c1, %c0_13, %c0_14] : memref<1x16x16x256xf32, #tpu.memory_space<vmem>>, vector<1x1x16x256xf32>
    %11 = vector.shape_cast %10 : vector<1x1x16x256xf32> to vector<16x256xf32>
    %12 = arith.truncf %11 : vector<16x256xf32> to vector<16x256xbf16>
    %cst_15 = arith.constant dense<0.000000e+00> : vector<16x256xf32>
    %13 = tpu.matmul %0, %12, %cst_15 {dimension_numbers = #tpu.dot_dimension_numbers<[1], [0], [0], [1], [0, 0, 1, 1], [], []>} : vector<16x16xbf16>, vector<16x256xbf16>, vector<16x256xf32> -> vector<16x256xf32>
    %c1_16 = arith.constant 1 : index
    %c0_17 = arith.constant 0 : index
    %c0_18 = arith.constant 0 : index
    %14 = vector.load %arg7[%c1_16, %c0_17, %c0_18] : memref<16x16x256xf32, #tpu.memory_space<vmem>>, vector<1x16x256xf32>
    %15 = vector.shape_cast %14 : vector<1x16x256xf32> to vector<16x256xf32>
    %16 = vector.shape_cast %13 : vector<16x256xf32> to vector<1x16x256xf32>
    tpu.vector_store %arg7[%c1_16, %c0_17, %c0_18], %16 {strides = array<i32>} : memref<16x16x256xf32, #tpu.memory_space<vmem>>, vector<1x16x256xf32>,
    %17 = arith.maximumf %6, %13 : vector<16x256xf32>
    %c0_19 = arith.constant 0 : index
    %c2 = arith.constant 2 : index
    %c0_20 = arith.constant 0 : index
    %c0_21 = arith.constant 0 : index
    %18 = vector.load %arg2[%c0_19, %c2, %c0_20, %c0_21] : memref<1x16x16x256xf32, #tpu.memory_space<vmem>>, vector<1x1x16x256xf32>
    %19 = vector.shape_cast %18 : vector<1x1x16x256xf32> to vector<16x256xf32>
    %20 = arith.truncf %19 : vector<16x256xf32> to vector<16x256xbf16>
    %cst_22 = arith.constant dense<0.000000e+00> : vector<16x256xf32>
    %21 = tpu.matmul %0, %20, %cst_22 {dimension_numbers = #tpu.dot_dimension_numbers<[1], [0], [0], [1], [0, 0, 1, 1], [], []>} : vector<16x16xbf16>, vector<16x256xbf16>, vector<16x256xf32> -> vector<16x256xf32>
    %c2_23 = arith.constant 2 : index
    %c0_24 = arith.constant 0 : index
    %c0_25 = arith.constant 0 : index
    %22 = vector.load %arg7[%c2_23, %c0_24, %c0_25] : memref<16x16x256xf32, #tpu.memory_space<vmem>>, vector<1x16x256xf32>
    %23 = vector.shape_cast %22 : vector<1x16x256xf32> to vector<16x256xf32>
    %24 = vector.shape_cast %21 : vector<16x256xf32> to vector<1x16x256xf32>
    tpu.vector_store %arg7[%c2_23, %c0_24, %c0_25], %24 {strides = array<i32>} : memref<16x16x256xf32, #tpu.memory_space<vmem>>, vector<1x16x256xf32>,
    %25 = arith.maximumf %17, %21 : vector<16x256xf32>
    %c0_26 = arith.constant 0 : index
    %c3 = arith.constant 3 : index
    %c0_27 = arith.constant 0 : index
    %c0_28 = arith.constant 0 : index
    %26 = vector.load %arg2[%c0_26, %c3, %c0_27, %c0_28] : memref<1x16x16x256xf32, #tpu.memory_space<vmem>>, vector<1x1x16x256xf32>
    %27 = vector.shape_cast %26 : vector<1x1x16x256xf32> to vector<16x256xf32>
    %28 = arith.truncf %27 : vector<16x256xf32> to vector<16x256xbf16>
    %cst_29 = arith.constant dense<0.000000e+00> : vector<16x256xf32>
    %29 = tpu.matmul %0, %28, %cst_29 {dimension_numbers = #tpu.dot_dimension_numbers<[1], [0], [0], [1], [0, 0, 1, 1], [], []>} : vector<16x16xbf16>, vector<16x256xbf16>, vector<16x256xf32> -> vector<16x256xf32>
    %c3_30 = arith.constant 3 : index
    %c0_31 = arith.constant 0 : index
    %c0_32 = arith.constant 0 : index
    %30 = vector.load %arg7[%c3_30, %c0_31, %c0_32] : memref<16x16x256xf32, #tpu.memory_space<vmem>>, vector<1x16x256xf32>
    %31 = vector.shape_cast %30 : vector<1x16x256xf32> to vector<16x256xf32>
    %32 = vector.shape_cast %29 : vector<16x256xf32> to vector<1x16x256xf32>
    tpu.vector_store %arg7[%c3_30, %c0_31, %c0_32], %32 {strides = array<i32>} : memref<16x16x256xf32, #tpu.memory_space<vmem>>, vector<1x16x256xf32>,
    %33 = arith.maximumf %25, %29 : vector<16x256xf32>
    %c0_33 = arith.constant 0 : index
    %c4 = arith.constant 4 : index
    %c0_34 = arith.constant 0 : index
    %c0_35 = arith.constant 0 : index
    %34 = vector.load %arg2[%c0_33, %c4, %c0_34, %c0_35] : memref<1x16x16x256xf32, #tpu.memory_space<vmem>>, vector<1x1x16x256xf32>
    %35 = vector.shape_cast %34 : vector<1x1x16x256xf32> to vector<16x256xf32>
    %36 = arith.truncf %35 : vector<16x256xf32> to vector<16x256xbf16>
    %cst_36 = arith.constant dense<0.000000e+00> : vector<16x256xf32>
    %37 = tpu.matmul %0, %36, %cst_36 {dimension_numbers = #tpu.dot_dimension_numbers<[1], [0], [0], [1], [0, 0, 1, 1], [], []>} : vector<16x16xbf16>, vector<16x256xbf16>, vector<16x256xf32> -> vector<16x256xf32>
    %c4_37 = arith.constant 4 : index
    %c0_38 = arith.constant 0 : index
    %c0_39 = arith.constant 0 : index
    %38 = vector.load %arg7[%c4_37, %c0_38, %c0_39] : memref<16x16x256xf32, #tpu.memory_space<vmem>>, vector<1x16x256xf32>
    %39 = vector.shape_cast %38 : vector<1x16x256xf32> to vector<16x256xf32>
    %40 = vector.shape_cast %37 : vector<16x256xf32> to vector<1x16x256xf32>
    tpu.vector_store %arg7[%c4_37, %c0_38, %c0_39], %40 {strides = array<i32>} : memref<16x16x256xf32, #tpu.memory_space<vmem>>, vector<1x16x256xf32>,
    %41 = arith.maximumf %33, %37 : vector<16x256xf32>
    %c0_40 = arith.constant 0 : index
    %c5 = arith.constant 5 : index
    %c0_41 = arith.constant 0 : index
    %c0_42 = arith.constant 0 : index
    %42 = vector.load %arg2[%c0_40, %c5, %c0_41, %c0_42] : memref<1x16x16x256xf32, #tpu.memory_space<vmem>>, vector<1x1x16x256xf32>
    %43 = vector.shape_cast %42 : vector<1x1x16x256xf32> to vector<16x256xf32>
    %44 = arith.truncf %43 : vector<16x256xf32> to vector<16x256xbf16>
    %cst_43 = arith.constant dense<0.000000e+00> : vector<16x256xf32>
    %45 = tpu.matmul %0, %44, %cst_43 {dimension_numbers = #tpu.dot_dimension_numbers<[1], [0], [0], [1], [0, 0, 1, 1], [], []>} : vector<16x16xbf16>, vector<16x256xbf16>, vector<16x256xf32> -> vector<16x256xf32>
    %c5_44 = arith.constant 5 : index
    %c0_45 = arith.constant 0 : index
    %c0_46 = arith.constant 0 : index
    %46 = vector.load %arg7[%c5_44, %c0_45, %c0_46] : memref<16x16x256xf32, #tpu.memory_space<vmem>>, vector<1x16x256xf32>
    %47 = vector.shape_cast %46 : vector<1x16x256xf32> to vector<16x256xf32>
    %48 = vector.shape_cast %45 : vector<16x256xf32> to vector<1x16x256xf32>
    tpu.vector_store %arg7[%c5_44, %c0_45, %c0_46], %48 {strides = array<i32>} : memref<16x16x256xf32, #tpu.memory_space<vmem>>, vector<1x16x256xf32>,
    %49 = arith.maximumf %41, %45 : vector<16x256xf32>
    %c0_47 = arith.constant 0 : index
    %c6 = arith.constant 6 : index
    %c0_48 = arith.constant 0 : index
    %c0_49 = arith.constant 0 : index
    %50 = vector.load %arg2[%c0_47, %c6, %c0_48, %c0_49] : memref<1x16x16x256xf32, #tpu.memory_space<vmem>>, vector<1x1x16x256xf32>
    %51 = vector.shape_cast %50 : vector<1x1x16x256xf32> to vector<16x256xf32>
    %52 = arith.truncf %51 : vector<16x256xf32> to vector<16x256xbf16>
    %cst_50 = arith.constant dense<0.000000e+00> : vector<16x256xf32>
    %53 = tpu.matmul %0, %52, %cst_50 {dimension_numbers = #tpu.dot_dimension_numbers<[1], [0], [0], [1], [0, 0, 1, 1], [], []>} : vector<16x16xbf16>, vector<16x256xbf16>, vector<16x256xf32> -> vector<16x256xf32>
    %c6_51 = arith.constant 6 : index
    %c0_52 = arith.constant 0 : index
    %c0_53 = arith.constant 0 : index
    %54 = vector.load %arg7[%c6_51, %c0_52, %c0_53] : memref<16x16x256xf32, #tpu.memory_space<vmem>>, vector<1x16x256xf32>
    %55 = vector.shape_cast %54 : vector<1x16x256xf32> to vector<16x256xf32>
    %56 = vector.shape_cast %53 : vector<16x256xf32> to vector<1x16x256xf32>
    tpu.vector_store %arg7[%c6_51, %c0_52, %c0_53], %56 {strides = array<i32>} : memref<16x16x256xf32, #tpu.memory_space<vmem>>, vector<1x16x256xf32>,
    %57 = arith.maximumf %49, %53 : vector<16x256xf32>
    %c0_54 = arith.constant 0 : index
    %c7 = arith.constant 7 : index
    %c0_55 = arith.constant 0 : index
    %c0_56 = arith.constant 0 : index
    %58 = vector.load %arg2[%c0_54, %c7, %c0_55, %c0_56] : memref<1x16x16x256xf32, #tpu.memory_space<vmem>>, vector<1x1x16x256xf32>
    %59 = vector.shape_cast %58 : vector<1x1x16x256xf32> to vector<16x256xf32>
    %60 = arith.truncf %59 : vector<16x256xf32> to vector<16x256xbf16>
    %cst_57 = arith.constant dense<0.000000e+00> : vector<16x256xf32>
    %61 = tpu.matmul %0, %60, %cst_57 {dimension_numbers = #tpu.dot_dimension_numbers<[1], [0], [0], [1], [0, 0, 1, 1], [], []>} : vector<16x16xbf16>, vector<16x256xbf16>, vector<16x256xf32> -> vector<16x256xf32>
    %c7_58 = arith.constant 7 : index
    %c0_59 = arith.constant 0 : index
    %c0_60 = arith.constant 0 : index
    %62 = vector.load %arg7[%c7_58, %c0_59, %c0_60] : memref<16x16x256xf32, #tpu.memory_space<vmem>>, vector<1x16x256xf32>
    %63 = vector.shape_cast %62 : vector<1x16x256xf32> to vector<16x256xf32>
    %64 = vector.shape_cast %61 : vector<16x256xf32> to vector<1x16x256xf32>
    tpu.vector_store %arg7[%c7_58, %c0_59, %c0_60], %64 {strides = array<i32>} : memref<16x16x256xf32, #tpu.memory_space<vmem>>, vector<1x16x256xf32>,
    %65 = arith.maximumf %57, %61 : vector<16x256xf32>
    %c0_61 = arith.constant 0 : index
    %c8 = arith.constant 8 : index
    %c0_62 = arith.constant 0 : index
    %c0_63 = arith.constant 0 : index
    %66 = vector.load %arg2[%c0_61, %c8, %c0_62, %c0_63] : memref<1x16x16x256xf32, #tpu.memory_space<vmem>>, vector<1x1x16x256xf32>
    %67 = vector.shape_cast %66 : vector<1x1x16x256xf32> to vector<16x256xf32>
    %68 = arith.truncf %67 : vector<16x256xf32> to vector<16x256xbf16>
    %cst_64 = arith.constant dense<0.000000e+00> : vector<16x256xf32>
    %69 = tpu.matmul %0, %68, %cst_64 {dimension_numbers = #tpu.dot_dimension_numbers<[1], [0], [0], [1], [0, 0, 1, 1], [], []>} : vector<16x16xbf16>, vector<16x256xbf16>, vector<16x256xf32> -> vector<16x256xf32>
    %c8_65 = arith.constant 8 : index
    %c0_66 = arith.constant 0 : index
    %c0_67 = arith.constant 0 : index
    %70 = vector.load %arg7[%c8_65, %c0_66, %c0_67] : memref<16x16x256xf32, #tpu.memory_space<vmem>>, vector<1x16x256xf32>
    %71 = vector.shape_cast %70 : vector<1x16x256xf32> to vector<16x256xf32>
    %72 = vector.shape_cast %69 : vector<16x256xf32> to vector<1x16x256xf32>
    tpu.vector_store %arg7[%c8_65, %c0_66, %c0_67], %72 {strides = array<i32>} : memref<16x16x256xf32, #tpu.memory_space<vmem>>, vector<1x16x256xf32>,
    %73 = arith.maximumf %65, %69 : vector<16x256xf32>
    %c0_68 = arith.constant 0 : index
    %c9 = arith.constant 9 : index
    %c0_69 = arith.constant 0 : index
    %c0_70 = arith.constant 0 : index
    %74 = vector.load %arg2[%c0_68, %c9, %c0_69, %c0_70] : memref<1x16x16x256xf32, #tpu.memory_space<vmem>>, vector<1x1x16x256xf32>
    %75 = vector.shape_cast %74 : vector<1x1x16x256xf32> to vector<16x256xf32>
    %76 = arith.truncf %75 : vector<16x256xf32> to vector<16x256xbf16>
    %cst_71 = arith.constant dense<0.000000e+00> : vector<16x256xf32>
    %77 = tpu.matmul %0, %76, %cst_71 {dimension_numbers = #tpu.dot_dimension_numbers<[1], [0], [0], [1], [0, 0, 1, 1], [], []>} : vector<16x16xbf16>, vector<16x256xbf16>, vector<16x256xf32> -> vector<16x256xf32>
    %c9_72 = arith.constant 9 : index
    %c0_73 = arith.constant 0 : index
    %c0_74 = arith.constant 0 : index
    %78 = vector.load %arg7[%c9_72, %c0_73, %c0_74] : memref<16x16x256xf32, #tpu.memory_space<vmem>>, vector<1x16x256xf32>
    %79 = vector.shape_cast %78 : vector<1x16x256xf32> to vector<16x256xf32>
    %80 = vector.shape_cast %77 : vector<16x256xf32> to vector<1x16x256xf32>
    tpu.vector_store %arg7[%c9_72, %c0_73, %c0_74], %80 {strides = array<i32>} : memref<16x16x256xf32, #tpu.memory_space<vmem>>, vector<1x16x256xf32>,
    %81 = arith.maximumf %73, %77 : vector<16x256xf32>
    %c0_75 = arith.constant 0 : index
    %c10 = arith.constant 10 : index
    %c0_76 = arith.constant 0 : index
    %c0_77 = arith.constant 0 : index
    %82 = vector.load %arg2[%c0_75, %c10, %c0_76, %c0_77] : memref<1x16x16x256xf32, #tpu.memory_space<vmem>>, vector<1x1x16x256xf32>
    %83 = vector.shape_cast %82 : vector<1x1x16x256xf32> to vector<16x256xf32>
    %84 = arith.truncf %83 : vector<16x256xf32> to vector<16x256xbf16>
    %cst_78 = arith.constant dense<0.000000e+00> : vector<16x256xf32>
    %85 = tpu.matmul %0, %84, %cst_78 {dimension_numbers = #tpu.dot_dimension_numbers<[1], [0], [0], [1], [0, 0, 1, 1], [], []>} : vector<16x16xbf16>, vector<16x256xbf16>, vector<16x256xf32> -> vector<16x256xf32>
    %c10_79 = arith.constant 10 : index
    %c0_80 = arith.constant 0 : index
    %c0_81 = arith.constant 0 : index
    %86 = vector.load %arg7[%c10_79, %c0_80, %c0_81] : memref<16x16x256xf32, #tpu.memory_space<vmem>>, vector<1x16x256xf32>
    %87 = vector.shape_cast %86 : vector<1x16x256xf32> to vector<16x256xf32>
    %88 = vector.shape_cast %85 : vector<16x256xf32> to vector<1x16x256xf32>
    tpu.vector_store %arg7[%c10_79, %c0_80, %c0_81], %88 {strides = array<i32>} : memref<16x16x256xf32, #tpu.memory_space<vmem>>, vector<1x16x256xf32>,
    %89 = arith.maximumf %81, %85 : vector<16x256xf32>
    %c0_82 = arith.constant 0 : index
    %c11 = arith.constant 11 : index
    %c0_83 = arith.constant 0 : index
    %c0_84 = arith.constant 0 : index
    %90 = vector.load %arg2[%c0_82, %c11, %c0_83, %c0_84] : memref<1x16x16x256xf32, #tpu.memory_space<vmem>>, vector<1x1x16x256xf32>
    %91 = vector.shape_cast %90 : vector<1x1x16x256xf32> to vector<16x256xf32>
    %92 = arith.truncf %91 : vector<16x256xf32> to vector<16x256xbf16>
    %cst_85 = arith.constant dense<0.000000e+00> : vector<16x256xf32>
    %93 = tpu.matmul %0, %92, %cst_85 {dimension_numbers = #tpu.dot_dimension_numbers<[1], [0], [0], [1], [0, 0, 1, 1], [], []>} : vector<16x16xbf16>, vector<16x256xbf16>, vector<16x256xf32> -> vector<16x256xf32>
    %c11_86 = arith.constant 11 : index
    %c0_87 = arith.constant 0 : index
    %c0_88 = arith.constant 0 : index
    %94 = vector.load %arg7[%c11_86, %c0_87, %c0_88] : memref<16x16x256xf32, #tpu.memory_space<vmem>>, vector<1x16x256xf32>
    %95 = vector.shape_cast %94 : vector<1x16x256xf32> to vector<16x256xf32>
    %96 = vector.shape_cast %93 : vector<16x256xf32> to vector<1x16x256xf32>
    tpu.vector_store %arg7[%c11_86, %c0_87, %c0_88], %96 {strides = array<i32>} : memref<16x16x256xf32, #tpu.memory_space<vmem>>, vector<1x16x256xf32>,
    %97 = arith.maximumf %89, %93 : vector<16x256xf32>
    %c0_89 = arith.constant 0 : index
    %c12 = arith.constant 12 : index
    %c0_90 = arith.constant 0 : index
    %c0_91 = arith.constant 0 : index
    %98 = vector.load %arg2[%c0_89, %c12, %c0_90, %c0_91] : memref<1x16x16x256xf32, #tpu.memory_space<vmem>>, vector<1x1x16x256xf32>
    %99 = vector.shape_cast %98 : vector<1x1x16x256xf32> to vector<16x256xf32>
    %100 = arith.truncf %99 : vector<16x256xf32> to vector<16x256xbf16>
    %cst_92 = arith.constant dense<0.000000e+00> : vector<16x256xf32>
    %101 = tpu.matmul %0, %100, %cst_92 {dimension_numbers = #tpu.dot_dimension_numbers<[1], [0], [0], [1], [0, 0, 1, 1], [], []>} : vector<16x16xbf16>, vector<16x256xbf16>, vector<16x256xf32> -> vector<16x256xf32>
    %c12_93 = arith.constant 12 : index
    %c0_94 = arith.constant 0 : index
    %c0_95 = arith.constant 0 : index
    %102 = vector.load %arg7[%c12_93, %c0_94, %c0_95] : memref<16x16x256xf32, #tpu.memory_space<vmem>>, vector<1x16x256xf32>
    %103 = vector.shape_cast %102 : vector<1x16x256xf32> to vector<16x256xf32>
    %104 = vector.shape_cast %101 : vector<16x256xf32> to vector<1x16x256xf32>
    tpu.vector_store %arg7[%c12_93, %c0_94, %c0_95], %104 {strides = array<i32>} : memref<16x16x256xf32, #tpu.memory_space<vmem>>, vector<1x16x256xf32>,
    %105 = arith.maximumf %97, %101 : vector<16x256xf32>
    %c0_96 = arith.constant 0 : index
    %c13 = arith.constant 13 : index
    %c0_97 = arith.constant 0 : index
    %c0_98 = arith.constant 0 : index
    %106 = vector.load %arg2[%c0_96, %c13, %c0_97, %c0_98] : memref<1x16x16x256xf32, #tpu.memory_space<vmem>>, vector<1x1x16x256xf32>
    %107 = vector.shape_cast %106 : vector<1x1x16x256xf32> to vector<16x256xf32>
    %108 = arith.truncf %107 : vector<16x256xf32> to vector<16x256xbf16>
    %cst_99 = arith.constant dense<0.000000e+00> : vector<16x256xf32>
    %109 = tpu.matmul %0, %108, %cst_99 {dimension_numbers = #tpu.dot_dimension_numbers<[1], [0], [0], [1], [0, 0, 1, 1], [], []>} : vector<16x16xbf16>, vector<16x256xbf16>, vector<16x256xf32> -> vector<16x256xf32>
    %c13_100 = arith.constant 13 : index
    %c0_101 = arith.constant 0 : index
    %c0_102 = arith.constant 0 : index
    %110 = vector.load %arg7[%c13_100, %c0_101, %c0_102] : memref<16x16x256xf32, #tpu.memory_space<vmem>>, vector<1x16x256xf32>
    %111 = vector.shape_cast %110 : vector<1x16x256xf32> to vector<16x256xf32>
    %112 = vector.shape_cast %109 : vector<16x256xf32> to vector<1x16x256xf32>
    tpu.vector_store %arg7[%c13_100, %c0_101, %c0_102], %112 {strides = array<i32>} : memref<16x16x256xf32, #tpu.memory_space<vmem>>, vector<1x16x256xf32>,
    %113 = arith.maximumf %105, %109 : vector<16x256xf32>
    %c0_103 = arith.constant 0 : index
    %c14 = arith.constant 14 : index
    %c0_104 = arith.constant 0 : index
    %c0_105 = arith.constant 0 : index
    %114 = vector.load %arg2[%c0_103, %c14, %c0_104, %c0_105] : memref<1x16x16x256xf32, #tpu.memory_space<vmem>>, vector<1x1x16x256xf32>
    %115 = vector.shape_cast %114 : vector<1x1x16x256xf32> to vector<16x256xf32>
    %116 = arith.truncf %115 : vector<16x256xf32> to vector<16x256xbf16>
    %cst_106 = arith.constant dense<0.000000e+00> : vector<16x256xf32>
    %117 = tpu.matmul %0, %116, %cst_106 {dimension_numbers = #tpu.dot_dimension_numbers<[1], [0], [0], [1], [0, 0, 1, 1], [], []>} : vector<16x16xbf16>, vector<16x256xbf16>, vector<16x256xf32> -> vector<16x256xf32>
    %c14_107 = arith.constant 14 : index
    %c0_108 = arith.constant 0 : index
    %c0_109 = arith.constant 0 : index
    %118 = vector.load %arg7[%c14_107, %c0_108, %c0_109] : memref<16x16x256xf32, #tpu.memory_space<vmem>>, vector<1x16x256xf32>
    %119 = vector.shape_cast %118 : vector<1x16x256xf32> to vector<16x256xf32>
    %120 = vector.shape_cast %117 : vector<16x256xf32> to vector<1x16x256xf32>
    tpu.vector_store %arg7[%c14_107, %c0_108, %c0_109], %120 {strides = array<i32>} : memref<16x16x256xf32, #tpu.memory_space<vmem>>, vector<1x16x256xf32>,
    %121 = arith.maximumf %113, %117 : vector<16x256xf32>
    %c0_110 = arith.constant 0 : index
    %c15 = arith.constant 15 : index
    %c0_111 = arith.constant 0 : index
    %c0_112 = arith.constant 0 : index
    %122 = vector.load %arg2[%c0_110, %c15, %c0_111, %c0_112] : memref<1x16x16x256xf32, #tpu.memory_space<vmem>>, vector<1x1x16x256xf32>
    %123 = vector.shape_cast %122 : vector<1x1x16x256xf32> to vector<16x256xf32>
    %124 = arith.truncf %123 : vector<16x256xf32> to vector<16x256xbf16>
    %cst_113 = arith.constant dense<0.000000e+00> : vector<16x256xf32>
    %125 = tpu.matmul %0, %124, %cst_113 {dimension_numbers = #tpu.dot_dimension_numbers<[1], [0], [0], [1], [0, 0, 1, 1], [], []>} : vector<16x16xbf16>, vector<16x256xbf16>, vector<16x256xf32> -> vector<16x256xf32>
    %c15_114 = arith.constant 15 : index
    %c0_115 = arith.constant 0 : index
    %c0_116 = arith.constant 0 : index
    %126 = vector.load %arg7[%c15_114, %c0_115, %c0_116] : memref<16x16x256xf32, #tpu.memory_space<vmem>>, vector<1x16x256xf32>
    %127 = vector.shape_cast %126 : vector<1x16x256xf32> to vector<16x256xf32>
    %128 = vector.shape_cast %125 : vector<16x256xf32> to vector<1x16x256xf32>
    tpu.vector_store %arg7[%c15_114, %c0_115, %c0_116], %128 {strides = array<i32>} : memref<16x16x256xf32, #tpu.memory_space<vmem>>, vector<1x16x256xf32>,
    %129 = arith.maximumf %121, %125 : vector<16x256xf32>
    %cst_117 = arith.constant 0.000000e+00 : f32
    %130 = vector.broadcast %cst_117 : f32 to vector<16x256xf32>
    %cst_118 = arith.constant 0.000000e+00 : f32
    %131 = vector.broadcast %cst_118 : f32 to vector<16x256xf32>
    %c0_119 = arith.constant 0 : index
    %c0_120 = arith.constant 0 : index
    %c0_121 = arith.constant 0 : index
    %132 = vector.load %arg7[%c0_119, %c0_120, %c0_121] : memref<16x16x256xf32, #tpu.memory_space<vmem>>, vector<1x16x256xf32>
    %133 = vector.shape_cast %132 : vector<1x16x256xf32> to vector<16x256xf32>
    %134 = arith.subf %133, %129 : vector<16x256xf32>
    %135 = math.exp %134 : vector<16x256xf32>
    %136 = arith.addf %130, %135 : vector<16x256xf32>
    %c0_122 = arith.constant 0 : index
    %c0_123 = arith.constant 0 : index
    %c0_124 = arith.constant 0 : index
    %c0_125 = arith.constant 0 : index
    %137 = vector.load %arg2[%c0_122, %c0_123, %c0_124, %c0_125] : memref<1x16x16x256xf32, #tpu.memory_space<vmem>>, vector<1x1x16x256xf32>
    %138 = vector.shape_cast %137 : vector<1x1x16x256xf32> to vector<16x256xf32>
    %139 = arith.mulf %138, %135 : vector<16x256xf32>
    %140 = arith.addf %131, %139 : vector<16x256xf32>
    %c1_126 = arith.constant 1 : index
    %c0_127 = arith.constant 0 : index
    %c0_128 = arith.constant 0 : index
    %141 = vector.load %arg7[%c1_126, %c0_127, %c0_128] : memref<16x16x256xf32, #tpu.memory_space<vmem>>, vector<1x16x256xf32>
    %142 = vector.shape_cast %141 : vector<1x16x256xf32> to vector<16x256xf32>
    %143 = arith.subf %142, %129 : vector<16x256xf32>
    %144 = math.exp %143 : vector<16x256xf32>
    %145 = arith.addf %136, %144 : vector<16x256xf32>
    %c0_129 = arith.constant 0 : index
    %c1_130 = arith.constant 1 : index
    %c0_131 = arith.constant 0 : index
    %c0_132 = arith.constant 0 : index
    %146 = vector.load %arg2[%c0_129, %c1_130, %c0_131, %c0_132] : memref<1x16x16x256xf32, #tpu.memory_space<vmem>>, vector<1x1x16x256xf32>
    %147 = vector.shape_cast %146 : vector<1x1x16x256xf32> to vector<16x256xf32>
    %148 = arith.mulf %147, %144 : vector<16x256xf32>
    %149 = arith.addf %140, %148 : vector<16x256xf32>
    %c2_133 = arith.constant 2 : index
    %c0_134 = arith.constant 0 : index
    %c0_135 = arith.constant 0 : index
    %150 = vector.load %arg7[%c2_133, %c0_134, %c0_135] : memref<16x16x256xf32, #tpu.memory_space<vmem>>, vector<1x16x256xf32>
    %151 = vector.shape_cast %150 : vector<1x16x256xf32> to vector<16x256xf32>
    %152 = arith.subf %151, %129 : vector<16x256xf32>
    %153 = math.exp %152 : vector<16x256xf32>
    %154 = arith.addf %145, %153 : vector<16x256xf32>
    %c0_136 = arith.constant 0 : index
    %c2_137 = arith.constant 2 : index
    %c0_138 = arith.constant 0 : index
    %c0_139 = arith.constant 0 : index
    %155 = vector.load %arg2[%c0_136, %c2_137, %c0_138, %c0_139] : memref<1x16x16x256xf32, #tpu.memory_space<vmem>>, vector<1x1x16x256xf32>
    %156 = vector.shape_cast %155 : vector<1x1x16x256xf32> to vector<16x256xf32>
    %157 = arith.mulf %156, %153 : vector<16x256xf32>
    %158 = arith.addf %149, %157 : vector<16x256xf32>
    %c3_140 = arith.constant 3 : index
    %c0_141 = arith.constant 0 : index
    %c0_142 = arith.constant 0 : index
    %159 = vector.load %arg7[%c3_140, %c0_141, %c0_142] : memref<16x16x256xf32, #tpu.memory_space<vmem>>, vector<1x16x256xf32>
    %160 = vector.shape_cast %159 : vector<1x16x256xf32> to vector<16x256xf32>
    %161 = arith.subf %160, %129 : vector<16x256xf32>
    %162 = math.exp %161 : vector<16x256xf32>
    %163 = arith.addf %154, %162 : vector<16x256xf32>
    %c0_143 = arith.constant 0 : index
    %c3_144 = arith.constant 3 : index
    %c0_145 = arith.constant 0 : index
    %c0_146 = arith.constant 0 : index
    %164 = vector.load %arg2[%c0_143, %c3_144, %c0_145, %c0_146] : memref<1x16x16x256xf32, #tpu.memory_space<vmem>>, vector<1x1x16x256xf32>
    %165 = vector.shape_cast %164 : vector<1x1x16x256xf32> to vector<16x256xf32>
    %166 = arith.mulf %165, %162 : vector<16x256xf32>
    %167 = arith.addf %158, %166 : vector<16x256xf32>
    %c4_147 = arith.constant 4 : index
    %c0_148 = arith.constant 0 : index
    %c0_149 = arith.constant 0 : index
    %168 = vector.load %arg7[%c4_147, %c0_148, %c0_149] : memref<16x16x256xf32, #tpu.memory_space<vmem>>, vector<1x16x256xf32>
    %169 = vector.shape_cast %168 : vector<1x16x256xf32> to vector<16x256xf32>
    %170 = arith.subf %169, %129 : vector<16x256xf32>
    %171 = math.exp %170 : vector<16x256xf32>
    %172 = arith.addf %163, %171 : vector<16x256xf32>
    %c0_150 = arith.constant 0 : index
    %c4_151 = arith.constant 4 : index
    %c0_152 = arith.constant 0 : index
    %c0_153 = arith.constant 0 : index
    %173 = vector.load %arg2[%c0_150, %c4_151, %c0_152, %c0_153] : memref<1x16x16x256xf32, #tpu.memory_space<vmem>>, vector<1x1x16x256xf32>
    %174 = vector.shape_cast %173 : vector<1x1x16x256xf32> to vector<16x256xf32>
    %175 = arith.mulf %174, %171 : vector<16x256xf32>
    %176 = arith.addf %167, %175 : vector<16x256xf32>
    %c5_154 = arith.constant 5 : index
    %c0_155 = arith.constant 0 : index
    %c0_156 = arith.constant 0 : index
    %177 = vector.load %arg7[%c5_154, %c0_155, %c0_156] : memref<16x16x256xf32, #tpu.memory_space<vmem>>, vector<1x16x256xf32>
    %178 = vector.shape_cast %177 : vector<1x16x256xf32> to vector<16x256xf32>
    %179 = arith.subf %178, %129 : vector<16x256xf32>
    %180 = math.exp %179 : vector<16x256xf32>
    %181 = arith.addf %172, %180 : vector<16x256xf32>
    %c0_157 = arith.constant 0 : index
    %c5_158 = arith.constant 5 : index
    %c0_159 = arith.constant 0 : index
    %c0_160 = arith.constant 0 : index
    %182 = vector.load %arg2[%c0_157, %c5_158, %c0_159, %c0_160] : memref<1x16x16x256xf32, #tpu.memory_space<vmem>>, vector<1x1x16x256xf32>
    %183 = vector.shape_cast %182 : vector<1x1x16x256xf32> to vector<16x256xf32>
    %184 = arith.mulf %183, %180 : vector<16x256xf32>
    %185 = arith.addf %176, %184 : vector<16x256xf32>
    %c6_161 = arith.constant 6 : index
    %c0_162 = arith.constant 0 : index
    %c0_163 = arith.constant 0 : index
    %186 = vector.load %arg7[%c6_161, %c0_162, %c0_163] : memref<16x16x256xf32, #tpu.memory_space<vmem>>, vector<1x16x256xf32>
    %187 = vector.shape_cast %186 : vector<1x16x256xf32> to vector<16x256xf32>
    %188 = arith.subf %187, %129 : vector<16x256xf32>
    %189 = math.exp %188 : vector<16x256xf32>
    %190 = arith.addf %181, %189 : vector<16x256xf32>
    %c0_164 = arith.constant 0 : index
    %c6_165 = arith.constant 6 : index
    %c0_166 = arith.constant 0 : index
    %c0_167 = arith.constant 0 : index
    %191 = vector.load %arg2[%c0_164, %c6_165, %c0_166, %c0_167] : memref<1x16x16x256xf32, #tpu.memory_space<vmem>>, vector<1x1x16x256xf32>
    %192 = vector.shape_cast %191 : vector<1x1x16x256xf32> to vector<16x256xf32>
    %193 = arith.mulf %192, %189 : vector<16x256xf32>
    %194 = arith.addf %185, %193 : vector<16x256xf32>
    %c7_168 = arith.constant 7 : index
    %c0_169 = arith.constant 0 : index
    %c0_170 = arith.constant 0 : index
    %195 = vector.load %arg7[%c7_168, %c0_169, %c0_170] : memref<16x16x256xf32, #tpu.memory_space<vmem>>, vector<1x16x256xf32>
    %196 = vector.shape_cast %195 : vector<1x16x256xf32> to vector<16x256xf32>
    %197 = arith.subf %196, %129 : vector<16x256xf32>
    %198 = math.exp %197 : vector<16x256xf32>
    %199 = arith.addf %190, %198 : vector<16x256xf32>
    %c0_171 = arith.constant 0 : index
    %c7_172 = arith.constant 7 : index
    %c0_173 = arith.constant 0 : index
    %c0_174 = arith.constant 0 : index
    %200 = vector.load %arg2[%c0_171, %c7_172, %c0_173, %c0_174] : memref<1x16x16x256xf32, #tpu.memory_space<vmem>>, vector<1x1x16x256xf32>
    %201 = vector.shape_cast %200 : vector<1x1x16x256xf32> to vector<16x256xf32>
    %202 = arith.mulf %201, %198 : vector<16x256xf32>
    %203 = arith.addf %194, %202 : vector<16x256xf32>
    %c8_175 = arith.constant 8 : index
    %c0_176 = arith.constant 0 : index
    %c0_177 = arith.constant 0 : index
    %204 = vector.load %arg7[%c8_175, %c0_176, %c0_177] : memref<16x16x256xf32, #tpu.memory_space<vmem>>, vector<1x16x256xf32>
    %205 = vector.shape_cast %204 : vector<1x16x256xf32> to vector<16x256xf32>
    %206 = arith.subf %205, %129 : vector<16x256xf32>
    %207 = math.exp %206 : vector<16x256xf32>
    %208 = arith.addf %199, %207 : vector<16x256xf32>
    %c0_178 = arith.constant 0 : index
    %c8_179 = arith.constant 8 : index
    %c0_180 = arith.constant 0 : index
    %c0_181 = arith.constant 0 : index
    %209 = vector.load %arg2[%c0_178, %c8_179, %c0_180, %c0_181] : memref<1x16x16x256xf32, #tpu.memory_space<vmem>>, vector<1x1x16x256xf32>
    %210 = vector.shape_cast %209 : vector<1x1x16x256xf32> to vector<16x256xf32>
    %211 = arith.mulf %210, %207 : vector<16x256xf32>
    %212 = arith.addf %203, %211 : vector<16x256xf32>
    %c9_182 = arith.constant 9 : index
    %c0_183 = arith.constant 0 : index
    %c0_184 = arith.constant 0 : index
    %213 = vector.load %arg7[%c9_182, %c0_183, %c0_184] : memref<16x16x256xf32, #tpu.memory_space<vmem>>, vector<1x16x256xf32>
    %214 = vector.shape_cast %213 : vector<1x16x256xf32> to vector<16x256xf32>
    %215 = arith.subf %214, %129 : vector<16x256xf32>
    %216 = math.exp %215 : vector<16x256xf32>
    %217 = arith.addf %208, %216 : vector<16x256xf32>
    %c0_185 = arith.constant 0 : index
    %c9_186 = arith.constant 9 : index
    %c0_187 = arith.constant 0 : index
    %c0_188 = arith.constant 0 : index
    %218 = vector.load %arg2[%c0_185, %c9_186, %c0_187, %c0_188] : memref<1x16x16x256xf32, #tpu.memory_space<vmem>>, vector<1x1x16x256xf32>
    %219 = vector.shape_cast %218 : vector<1x1x16x256xf32> to vector<16x256xf32>
    %220 = arith.mulf %219, %216 : vector<16x256xf32>
    %221 = arith.addf %212, %220 : vector<16x256xf32>
    %c10_189 = arith.constant 10 : index
    %c0_190 = arith.constant 0 : index
    %c0_191 = arith.constant 0 : index
    %222 = vector.load %arg7[%c10_189, %c0_190, %c0_191] : memref<16x16x256xf32, #tpu.memory_space<vmem>>, vector<1x16x256xf32>
    %223 = vector.shape_cast %222 : vector<1x16x256xf32> to vector<16x256xf32>
    %224 = arith.subf %223, %129 : vector<16x256xf32>
    %225 = math.exp %224 : vector<16x256xf32>
    %226 = arith.addf %217, %225 : vector<16x256xf32>
    %c0_192 = arith.constant 0 : index
    %c10_193 = arith.constant 10 : index
    %c0_194 = arith.constant 0 : index
    %c0_195 = arith.constant 0 : index
    %227 = vector.load %arg2[%c0_192, %c10_193, %c0_194, %c0_195] : memref<1x16x16x256xf32, #tpu.memory_space<vmem>>, vector<1x1x16x256xf32>
    %228 = vector.shape_cast %227 : vector<1x1x16x256xf32> to vector<16x256xf32>
    %229 = arith.mulf %228, %225 : vector<16x256xf32>
    %230 = arith.addf %221, %229 : vector<16x256xf32>
    %c11_196 = arith.constant 11 : index
    %c0_197 = arith.constant 0 : index
    %c0_198 = arith.constant 0 : index
    %231 = vector.load %arg7[%c11_196, %c0_197, %c0_198] : memref<16x16x256xf32, #tpu.memory_space<vmem>>, vector<1x16x256xf32>
    %232 = vector.shape_cast %231 : vector<1x16x256xf32> to vector<16x256xf32>
    %233 = arith.subf %232, %129 : vector<16x256xf32>
    %234 = math.exp %233 : vector<16x256xf32>
    %235 = arith.addf %226, %234 : vector<16x256xf32>
    %c0_199 = arith.constant 0 : index
    %c11_200 = arith.constant 11 : index
    %c0_201 = arith.constant 0 : index
    %c0_202 = arith.constant 0 : index
    %236 = vector.load %arg2[%c0_199, %c11_200, %c0_201, %c0_202] : memref<1x16x16x256xf32, #tpu.memory_space<vmem>>, vector<1x1x16x256xf32>
    %237 = vector.shape_cast %236 : vector<1x1x16x256xf32> to vector<16x256xf32>
    %238 = arith.mulf %237, %234 : vector<16x256xf32>
    %239 = arith.addf %230, %238 : vector<16x256xf32>
    %c12_203 = arith.constant 12 : index
    %c0_204 = arith.constant 0 : index
    %c0_205 = arith.constant 0 : index
    %240 = vector.load %arg7[%c12_203, %c0_204, %c0_205] : memref<16x16x256xf32, #tpu.memory_space<vmem>>, vector<1x16x256xf32>
    %241 = vector.shape_cast %240 : vector<1x16x256xf32> to vector<16x256xf32>
    %242 = arith.subf %241, %129 : vector<16x256xf32>
    %243 = math.exp %242 : vector<16x256xf32>
    %244 = arith.addf %235, %243 : vector<16x256xf32>
    %c0_206 = arith.constant 0 : index
    %c12_207 = arith.constant 12 : index
    %c0_208 = arith.constant 0 : index
    %c0_209 = arith.constant 0 : index
    %245 = vector.load %arg2[%c0_206, %c12_207, %c0_208, %c0_209] : memref<1x16x16x256xf32, #tpu.memory_space<vmem>>, vector<1x1x16x256xf32>
    %246 = vector.shape_cast %245 : vector<1x1x16x256xf32> to vector<16x256xf32>
    %247 = arith.mulf %246, %243 : vector<16x256xf32>
    %248 = arith.addf %239, %247 : vector<16x256xf32>
    %c13_210 = arith.constant 13 : index
    %c0_211 = arith.constant 0 : index
    %c0_212 = arith.constant 0 : index
    %249 = vector.load %arg7[%c13_210, %c0_211, %c0_212] : memref<16x16x256xf32, #tpu.memory_space<vmem>>, vector<1x16x256xf32>
    %250 = vector.shape_cast %249 : vector<1x16x256xf32> to vector<16x256xf32>
    %251 = arith.subf %250, %129 : vector<16x256xf32>
    %252 = math.exp %251 : vector<16x256xf32>
    %253 = arith.addf %244, %252 : vector<16x256xf32>
    %c0_213 = arith.constant 0 : index
    %c13_214 = arith.constant 13 : index
    %c0_215 = arith.constant 0 : index
    %c0_216 = arith.constant 0 : index
    %254 = vector.load %arg2[%c0_213, %c13_214, %c0_215, %c0_216] : memref<1x16x16x256xf32, #tpu.memory_space<vmem>>, vector<1x1x16x256xf32>
    %255 = vector.shape_cast %254 : vector<1x1x16x256xf32> to vector<16x256xf32>
    %256 = arith.mulf %255, %252 : vector<16x256xf32>
    %257 = arith.addf %248, %256 : vector<16x256xf32>
    %c14_217 = arith.constant 14 : index
    %c0_218 = arith.constant 0 : index
    %c0_219 = arith.constant 0 : index
    %258 = vector.load %arg7[%c14_217, %c0_218, %c0_219] : memref<16x16x256xf32, #tpu.memory_space<vmem>>, vector<1x16x256xf32>
    %259 = vector.shape_cast %258 : vector<1x16x256xf32> to vector<16x256xf32>
    %260 = arith.subf %259, %129 : vector<16x256xf32>
    %261 = math.exp %260 : vector<16x256xf32>
    %262 = arith.addf %253, %261 : vector<16x256xf32>
    %c0_220 = arith.constant 0 : index
    %c14_221 = arith.constant 14 : index
    %c0_222 = arith.constant 0 : index
    %c0_223 = arith.constant 0 : index
    %263 = vector.load %arg2[%c0_220, %c14_221, %c0_222, %c0_223] : memref<1x16x16x256xf32, #tpu.memory_space<vmem>>, vector<1x1x16x256xf32>
    %264 = vector.shape_cast %263 : vector<1x1x16x256xf32> to vector<16x256xf32>
    %265 = arith.mulf %264, %261 : vector<16x256xf32>
    %266 = arith.addf %257, %265 : vector<16x256xf32>
    %c15_224 = arith.constant 15 : index
    %c0_225 = arith.constant 0 : index
    %c0_226 = arith.constant 0 : index
    %267 = vector.load %arg7[%c15_224, %c0_225, %c0_226] : memref<16x16x256xf32, #tpu.memory_space<vmem>>, vector<1x16x256xf32>
    %268 = vector.shape_cast %267 : vector<1x16x256xf32> to vector<16x256xf32>
    %269 = arith.subf %268, %129 : vector<16x256xf32>
    %270 = math.exp %269 : vector<16x256xf32>
    %271 = arith.addf %262, %270 : vector<16x256xf32>
    %c0_227 = arith.constant 0 : index
    %c15_228 = arith.constant 15 : index
    %c0_229 = arith.constant 0 : index
    %c0_230 = arith.constant 0 : index
    %272 = vector.load %arg2[%c0_227, %c15_228, %c0_229, %c0_230] : memref<1x16x16x256xf32, #tpu.memory_space<vmem>>, vector<1x1x16x256xf32>
    %273 = vector.shape_cast %272 : vector<1x1x16x256xf32> to vector<16x256xf32>
    %274 = arith.mulf %273, %270 : vector<16x256xf32>
    %275 = arith.addf %266, %274 : vector<16x256xf32>
    %276 = tpu.reciprocal %271 {approx = true} : vector<16x256xf32> -> vector<16x256xf32>
    %277 = arith.mulf %275, %276 : vector<16x256xf32>
    %cst_231 = arith.constant dense<0.000000e+00> : vector<32x256xf32>
    %278 = tpu.matmul %1, %277, %cst_231 {dimension_numbers = #tpu.dot_dimension_numbers<[1], [0], [0], [1], [0, 0, 1, 1], [], []>} : vector<32x16xf32>, vector<16x256xf32>, vector<32x256xf32> -> vector<32x256xf32>
    %279 = vector.broadcast %2 : vector<32x1xf32> to vector<32x256xf32>
    %280 = arith.addf %278, %279 : vector<32x256xf32>
    %cst_232 = arith.constant 0.000000e+00 : f32
    %281 = vector.broadcast %cst_232 : f32 to vector<32x256xf32>
    %282 = arith.maximumf %280, %281 : vector<32x256xf32>
    %c0_233 = arith.constant 0 : index
    %c0_234 = arith.constant 0 : index
    %c0_235 = arith.constant 0 : index
    %283 = vector.load %arg6[%c0_233, %c0_234, %c0_235] : memref<1x32x256xf32, #tpu.memory_space<vmem>>, vector<1x32x256xf32>
    %284 = vector.shape_cast %283 : vector<1x32x256xf32> to vector<32x256xf32>
    %285 = vector.shape_cast %282 : vector<32x256xf32> to vector<1x32x256xf32>
    tpu.vector_store %arg6[%c0_233, %c0_234, %c0_235], %285 {strides = array<i32>} : memref<1x32x256xf32, #tpu.memory_space<vmem>>, vector<1x32x256xf32>,
    return
  }
  func.func @transform_0(%arg0: i32, %arg1: i32) -> (i32, i32, i32, i32) {
    %c0_i32 = arith.constant 0 : i32
    %c0_i32_0 = arith.constant 0 : i32
    %c0_i32_1 = arith.constant 0 : i32
    return %arg0, %c0_i32, %c0_i32_0, %arg1 : i32, i32, i32, i32
  }
  func.func @transform_1(%arg0: i32, %arg1: i32) -> (i32, i32) {
    %c0_i32 = arith.constant 0 : i32
    %c0_i32_0 = arith.constant 0 : i32
    %c0_i32_1 = arith.constant 0 : i32
    return %c0_i32, %c0_i32_0 : i32, i32
  }
  func.func @transform_2(%arg0: i32, %arg1: i32) -> (i32, i32) {
    %c0_i32 = arith.constant 0 : i32
    %c0_i32_0 = arith.constant 0 : i32
    %c0_i32_1 = arith.constant 0 : i32
    return %c0_i32, %c0_i32_0 : i32, i32
  }
  func.func @transform_3(%arg0: i32, %arg1: i32) -> (i32, i32) {
    %c0_i32 = arith.constant 0 : i32
    %c0_i32_0 = arith.constant 0 : i32
    %c0_i32_1 = arith.constant 0 : i32
    return %c0_i32, %c0_i32_0 : i32, i32
  }
  func.func @transform_4(%arg0: i32, %arg1: i32) -> (i32, i32, i32) {
    %c0_i32 = arith.constant 0 : i32
    %c0_i32_0 = arith.constant 0 : i32
    return %arg0, %c0_i32, %arg1 : i32, i32, i32
  }
}

</mosaic_0001>

<bundles_post_ra>
// kernel: att_pooling.1
= control target key start
LH: loop header
LB: loop body
LE: loop exit
PB: predicated region body
PF: predicated region fallthrough
CT: control target
= control target key end

     0   :  { %s2325_s15 = smov 0   ;;  %s2327_s16 = smov 0   ;;  %s3107_s0 = inlined_call_operand.vmem [shape: f32[2,16,16,256], index: 0, kind: input, shape index: {}]   ;;  %s3108_s1 = inlined_call_operand.vmem [shape: bf16[16,16], index: 1, kind: input, shape index: {}]   ;;  %s3109_s2 = inlined_call_operand.vmem [shape: f32[32,16], index: 2, kind: input, shape index: {}]   ;;  %s3110_s3 = inlined_call_operand.vmem [shape: f32[32,1], index: 3, kind: input, shape index: {}]   ;;  %s3111_s4 = inlined_call_operand.vmem [shape: f32[2,32,256], index: 4, kind: output, shape index: {}]  }
   0x1   :  { %s2329_s17 = smov 0  }
   0x2 LB: > { %s26_s18 = sadd.s32 1, %s2292_s16  ;;  %p1943_p0 = scmp.ge.s32.totalorder %s2296_s17, 1  ;;  %s2296_s17 = sphi %s2329_s17, %s14_s17   ;;  %s2292_s16 = sphi %s2327_s16, %s3164_s16   ;;  %s2288_s15 = sphi %s2325_s15, %s3163_s15  }
   0x3   : > { %p28_p1 = scmp.ge.s32.totalorder %s26_s18, 2  ;;  %p183_p2 = scmp.lt.s32.totalorder %s2296_s17, 3 }
   0x5   : > { %s3166_s18 = smov (%p28_p1, %s26_s18), 0  ;;  %p184_p3 = pnand %p1943_p0, %p183_p2 }
   0x7   : > { %187 = sbr.rel (%p184_p3) target bundleno = 607 (0x25f), region = 36 }
   0xc   : > { %p218_p4 = scmp.lt.s32.totalorder %s2288_s15, 1  ;;  %v2298_v0 = vmov 0   ;;  %v2362_v6 = vld [vmem:[%s3108_s1] sm:$0xff]   ;;  %vm259_vm0 = vcmask 130048  }
   0xd   : > { %295 = vmatprep.mubr.bf16.mxu1 %v2298_v0  ;;  %408 = vmatprep.mubr.bf16.mxu0 %v2298_v0 }
   0xe   : > { %s3168_s15 = smov (!%p218_p4, %s2288_s15), 1  ;;  %2119 = vset.pattern.permute.xlu0 %v2298_v0  ;;  %2120 = vset.pattern.permute.xlu1 %v2298_v0 }
   0xf   : > { %s2091_s19 = sshll.u32 %s3168_s15, 9 }
  0x10   : > { %s2353_s22 = scalar_lea.vmem %s3107_s0, %s2091_s19  ;;  %s2092_s19 = sshll.u32 %s3168_s15, 6 }
  0x11   : > { %v249_v1 = vld [vmem:[%s2353_s22 + $0x8] sm:$0xff]  ;;  %v251_v2 = vld [vmem:[%s2353_s22 + $0x18] sm:$0xff]  ;;  %v248_v3 = vld [vmem:[%s2353_s22] sm:$0xff] }
  0x12   : > { %v253_v4 = vpack.c.bf16 %v251_v2, %v249_v1  ;;  %v250_v5 = vld [vmem:[%s2353_s22 + $0x10] sm:$0xff]  ;;  %v1951_v7 = vld [vmem:[%s2353_s22 + $0x28] sm:$0xff]  ;;  %v1953_v8 = vld [vmem:[%s2353_s22 + $0x38] sm:$0xff] }
  0x13   : > { %v252_v9 = vpack.c.bf16 %v250_v5, %v248_v3  ;;  %v316_v10 = vpack.c.bf16 %v1953_v8, %v1951_v7  ;;  %v1956_v11 = vld [vmem:[%s2353_s22 + $0x48] sm:$0xff]  ;;  %v1958_v12 = vld [vmem:[%s2353_s22 + $0x58] sm:$0xff]  ;;  %v1950_v13 = vld [vmem:[%s2353_s22 + $0x20] sm:$0xff] }
  0x14   : > { %277 = vmatprep.subr.bf16.mxu1 %v253_v4  ;;  %v375_v14 = vpack.c.bf16 %v1958_v12, %v1956_v11  ;;  %v1952_v15 = vld [vmem:[%s2353_s22 + $0x30] sm:$0xff]  ;;  %v1955_v16 = vld [vmem:[%s2353_s22 + $0x40] sm:$0xff]  ;;  %v1961_v20 = vld [vmem:[%s2353_s22 + $0x68] sm:$0xff] }
  0x15   : > { %v1957_v17 = vld [vmem:[%s2353_s22 + $0x50] sm:$0xff]  ;;  %278 = vmatpush1.bf16.msra.mxu1 %v252_v9  ;;  %v315_v18 = vpack.c.bf16 %v1952_v15, %v1950_v13  ;;  %v1963_v21 = vld [vmem:[%s2353_s22 + $0x78] sm:$0xff]  ;;  %v1966_v22 = vld [vmem:[%s2353_s22 + $0x88] sm:$0xff] }
  0x16   : > { %v374_v19 = vpack.c.bf16 %v1957_v17, %v1955_v16  ;;  %331 = vmatprep.subr.bf16.mxu1 %v316_v10  ;;  %390 = vmatprep.subr.bf16.mxu0 %v375_v14  ;;  %v434_v23 = vpack.c.bf16 %v1963_v21, %v1961_v20  ;;  %v1968_v24 = vld [vmem:[%s2353_s22 + $0x98] sm:$0xff]  ;;  %v1965_v26 = vld [vmem:[%s2353_s22 + $0x80] sm:$0xff]  ;;  %v1967_v27 = vld [vmem:[%s2353_s22 + $0x90] sm:$0xff] }
  0x17   : > { %v493_v25 = vpack.c.bf16 %v1968_v24, %v1966_v22  ;;  %v492_v28 = vpack.c.bf16 %v1967_v27, %v1965_v26  ;;  %v1976_v29 = vld [vmem:[%s2353_s22 + $0xc8] sm:$0xff]  ;;  %v1978_v30 = vld [vmem:[%s2353_s22 + $0xd8] sm:$0xff]  ;;  %v1960_v32 = vld [vmem:[%s2353_s22 + $0x60] sm:$0xff] }
  0x18   : > { %391 = vmatpush1.bf16.msra.mxu0 %v374_v19  ;;  %1949 = vmatmul.mubr.msk.bf16.vlgmr.msra.gmra.mxu1 %vm259_vm0, %v2362_v6  ;;  %v611_v31 = vpack.c.bf16 %v1978_v30, %v1976_v29  ;;  %v1962_v33 = vld [vmem:[%s2353_s22 + $0x70] sm:$0xff]  ;;  %v1971_v34 = vld [vmem:[%s2353_s22 + $0xa8] sm:$0xff]  ;;  %v1973_v35 = vld [vmem:[%s2353_s22 + $0xb8] sm:$0xff] }
  0x19   : > { %332 = vmatpush1.bf16.msra.mxu1 %v315_v18  ;;  %349 = vmatprep.mubr.bf16.mxu1 %v2298_v0  ;;  %v1975_v36 = vld [vmem:[%s2353_s22 + $0xc0] sm:$0xff]  ;;  %v1977_v37 = vld [vmem:[%s2353_s22 + $0xd0] sm:$0xff]  ;;  %v433_v38 = vpack.c.bf16 %v1962_v33, %v1960_v32  ;;  %v1986_v39 = vld [vmem:[%s2353_s22 + $0x108] sm:$0xff]  ;;  %v552_v41 = vpack.c.bf16 %v1973_v35, %v1971_v34 }
  0x1a   : > { %449 = vmatprep.subr.bf16.mxu1 %v434_v23  ;;  %508 = vmatprep.subr.bf16.mxu0 %v493_v25  ;;  %v1988_v40 = vld [vmem:[%s2353_s22 + $0x118] sm:$0xff]  ;;  %v610_v42 = vpack.c.bf16 %v1977_v37, %v1975_v36  ;;  %v1970_v44 = vld [vmem:[%s2353_s22 + $0xa0] sm:$0xff]  ;;  %v1972_v45 = vld [vmem:[%s2353_s22 + $0xb0] sm:$0xff] }
  0x1b   : > { %1959 = vmatmul.mubr.msk.bf16.vlgmr.msra.gmra.mxu0 %vm259_vm0, %v2362_v6  ;;  %v729_v43 = vpack.c.bf16 %v1988_v40, %v1986_v39  ;;  %v1981_v46 = vld [vmem:[%s2353_s22 + $0xe8] sm:$0xff]  ;;  %v1983_v47 = vld [vmem:[%s2353_s22 + $0xf8] sm:$0xff]  ;;  %v1985_v48 = vld [vmem:[%s2353_s22 + $0x100] sm:$0xff]  ;;  %v551_v50 = vpack.c.bf16 %v1972_v45, %v1970_v44 }
  0x1c   : > { %526 = vmatprep.mubr.bf16.mxu0 %v2298_v0  ;;  %509 = vmatpush1.bf16.msra.mxu0 %v492_v28  ;;  %v1987_v49 = vld [vmem:[%s2353_s22 + $0x110] sm:$0xff]  ;;  %v1996_v51 = vld [vmem:[%s2353_s22 + $0x148] sm:$0xff]  ;;  %v1998_v52 = vld [vmem:[%s2353_s22 + $0x158] sm:$0xff]  ;;  %v670_v53 = vpack.c.bf16 %v1983_v47, %v1981_v46 }
  0x1d   : > { %626 = vmatprep.subr.bf16.mxu0 %v611_v31  ;;  %v728_v54 = vpack.c.bf16 %v1987_v49, %v1985_v48  ;;  %v847_v55 = vpack.c.bf16 %v1998_v52, %v1996_v51  ;;  %v1980_v56 = vld [vmem:[%s2353_s22 + $0xe0] sm:$0xff]  ;;  %v1982_v57 = vld [vmem:[%s2353_s22 + $0xf0] sm:$0xff]  ;;  %v1991_v58 = vld [vmem:[%s2353_s22 + $0x128] sm:$0xff] }
  0x1e   : > { %v1993_v59 = vld [vmem:[%s2353_s22 + $0x138] sm:$0xff]  ;;  %v1995_v60 = vld [vmem:[%s2353_s22 + $0x140] sm:$0xff]  ;;  %v1997_v61 = vld [vmem:[%s2353_s22 + $0x150] sm:$0xff]  ;;  %v669_v62 = vpack.c.bf16 %v1982_v57, %v1980_v56 }
  0x1f   : > { %v2006_v63 = vld [vmem:[%s2353_s22 + $0x188] sm:$0xff]  ;;  %v2008_v1 = vld [vmem:[%s2353_s22 + $0x198] sm:$0xff]  ;;  %v788_v2 = vpack.c.bf16 %v1993_v59, %v1991_v58  ;;  %v846_v3 = vpack.c.bf16 %v1997_v61, %v1995_v60  ;;  %v1990_v5 = vld [vmem:[%s2353_s22 + $0x120] sm:$0xff] }
  0x20   : > { %1954 = vmatmul.mubr.msk.bf16.vlgmr.msra.gmra.mxu1 %vm259_vm0, %v2362_v6  ;;  %v965_v4 = vpack.c.bf16 %v2008_v1, %v2006_v63  ;;  %v1992_v7 = vld [vmem:[%s2353_s22 + $0x130] sm:$0xff]  ;;  %v2001_v8 = vld [vmem:[%s2353_s22 + $0x168] sm:$0xff]  ;;  %v2003_v9 = vld [vmem:[%s2353_s22 + $0x178] sm:$0xff] }
  0x21   : > { %450 = vmatpush1.bf16.msra.mxu1 %v433_v38  ;;  %467 = vmatprep.mubr.bf16.mxu1 %v2298_v0  ;;  %v2005_v10 = vld [vmem:[%s2353_s22 + $0x180] sm:$0xff]  ;;  %v2007_v11 = vld [vmem:[%s2353_s22 + $0x190] sm:$0xff]  ;;  %v787_v12 = vpack.c.bf16 %v1992_v7, %v1990_v5  ;;  %v2016_v13 = vld [vmem:[%s2353_s22 + $0x1c8] sm:$0xff]  ;;  %v906_v15 = vpack.c.bf16 %v2003_v9, %v2001_v8 }
  0x22   : > { %567 = vmatprep.subr.bf16.mxu1 %v552_v41  ;;  %v2018_v14 = vld [vmem:[%s2353_s22 + $0x1d8] sm:$0xff]  ;;  %v964_v16 = vpack.c.bf16 %v2007_v11, %v2005_v10  ;;  %v2000_v18 = vld [vmem:[%s2353_s22 + $0x160] sm:$0xff]  ;;  %v2002_v19 = vld [vmem:[%s2353_s22 + $0x170] sm:$0xff] }
  0x23   : > { %1969 = vmatmul.mubr.msk.bf16.vlgmr.msra.gmra.mxu0 %vm259_vm0, %v2362_v6  ;;  %v1083_v17 = vpack.c.bf16 %v2018_v14, %v2016_v13  ;;  %v2011_v20 = vld [vmem:[%s2353_s22 + $0x1a8] sm:$0xff]  ;;  %v2013_v21 = vld [vmem:[%s2353_s22 + $0x1b8] sm:$0xff]  ;;  %v2015_v22 = vld [vmem:[%s2353_s22 + $0x1c0] sm:$0xff]  ;;  %v905_v24 = vpack.c.bf16 %v2002_v19, %v2000_v18 }
  0x24   : > { %627 = vmatpush1.bf16.msra.mxu0 %v610_v42  ;;  %644 = vmatprep.mubr.bf16.mxu0 %v2298_v0  ;;  %v2017_v23 = vld [vmem:[%s2353_s22 + $0x1d0] sm:$0xff]  ;;  %v1024_v25 = vpack.c.bf16 %v2013_v21, %v2011_v20  ;;  %v2010_v27 = vld [vmem:[%s2353_s22 + $0x1a0] sm:$0xff]  ;;  %v2021_v29 = vld [vmem:[%s2353_s22 + $0x1e8] sm:$0xff] }
  0x25   : > { %744 = vmatprep.subr.bf16.mxu0 %v729_v43  ;;  %v1082_v26 = vpack.c.bf16 %v2017_v23, %v2015_v22  ;;  %v2012_v28 = vld [vmem:[%s2353_s22 + $0x1b0] sm:$0xff]  ;;  %v2023_v30 = vld [vmem:[%s2353_s22 + $0x1f8] sm:$0xff]  ;;  %v2020_v33 = vld [vmem:[%s2353_s22 + $0x1e0] sm:$0xff] }
  0x26   : > { %v1023_v31 = vpack.c.bf16 %v2012_v28, %v2010_v27  ;;  %v1142_v32 = vpack.c.bf16 %v2023_v30, %v2021_v29  ;;  %v2022_v34 = vld [vmem:[%s2353_s22 + $0x1f0] sm:$0xff] }
  0x27   : > { %v1141_v35 = vpack.c.bf16 %v2022_v34, %v2020_v33 }
  0x28   : > { %1964 = vmatmul.mubr.msk.bf16.vlgmr.msra.gmra.mxu1 %vm259_vm0, %v2362_v6 }
  0x29   : > { %568 = vmatpush1.bf16.msra.mxu1 %v551_v50  ;;  %585 = vmatprep.mubr.bf16.mxu1 %v2298_v0 }
  0x2a   : > { %685 = vmatprep.subr.bf16.mxu1 %v670_v53 }
  0x2b   : > { %1979 = vmatmul.mubr.msk.bf16.vlgmr.msra.gmra.mxu0 %vm259_vm0, %v2362_v6 }
  0x2c   : > { %745 = vmatpush1.bf16.msra.mxu0 %v728_v54  ;;  %762 = vmatprep.mubr.bf16.mxu0 %v2298_v0 }
  0x2d   : > { %862 = vmatprep.subr.bf16.mxu0 %v847_v55 }
  0x30   : > { %1974 = vmatmul.mubr.msk.bf16.vlgmr.msra.gmra.mxu1 %vm259_vm0, %v2362_v6 }
  0x31   : > { %686 = vmatpush1.bf16.msra.mxu1 %v669_v62  ;;  %703 = vmatprep.mubr.bf16.mxu1 %v2298_v0 }
  0x32   : > { %803 = vmatprep.subr.bf16.mxu1 %v788_v2 }
  0x33   : > { %1989 = vmatmul.mubr.msk.bf16.vlgmr.msra.gmra.mxu0 %vm259_vm0, %v2362_v6 }
  0x34   : > { %863 = vmatpush1.bf16.msra.mxu0 %v846_v3  ;;  %880 = vmatprep.mubr.bf16.mxu0 %v2298_v0 }
  0x35   : > { %980 = vmatprep.subr.bf16.mxu0 %v965_v4 }
  0x38   : > { %1984 = vmatmul.mubr.msk.bf16.vlgmr.msra.gmra.mxu1 %vm259_vm0, %v2362_v6 }
  0x39   : > { %804 = vmatpush1.bf16.msra.mxu1 %v787_v12  ;;  %821 = vmatprep.mubr.bf16.mxu1 %v2298_v0 }
  0x3a   : > { %921 = vmatprep.subr.bf16.mxu1 %v906_v15 }
  0x3b   : > { %1999 = vmatmul.mubr.msk.bf16.vlgmr.msra.gmra.mxu0 %vm259_vm0, %v2362_v6 }
  0x3c   : > { %981 = vmatpush1.bf16.msra.mxu0 %v964_v16  ;;  %998 = vmatprep.mubr.bf16.mxu0 %v2298_v0 }
  0x3d   : > { %1098 = vmatprep.subr.bf16.mxu0 %v1083_v17 }
  0x40   : > { %1994 = vmatmul.mubr.msk.bf16.vlgmr.msra.gmra.mxu1 %vm259_vm0, %v2362_v6 }
  0x41   : > { %922 = vmatpush1.bf16.msra.mxu1 %v905_v24  ;;  %939 = vmatprep.mubr.bf16.mxu1 %v2298_v0 }
  0x42   : > { %1039 = vmatprep.subr.bf16.mxu1 %v1024_v25 }
  0x43   : > { %2009 = vmatmul.mubr.msk.bf16.vlgmr.msra.gmra.mxu0 %vm259_vm0, %v2362_v6 }
  0x44   : > { %1099 = vmatpush1.bf16.msra.mxu0 %v1082_v26  ;;  %1116 = vmatprep.mubr.bf16.mxu0 %v2298_v0 }
  0x48   : > { %2004 = vmatmul.mubr.msk.bf16.vlgmr.msra.gmra.mxu1 %vm259_vm0, %v2362_v6 }
  0x49   : > { %1040 = vmatpush1.bf16.msra.mxu1 %v1023_v31  ;;  %1057 = vmatprep.mubr.bf16.mxu1 %v2298_v0 }
  0x4a   : > { %1157 = vmatprep.subr.bf16.mxu1 %v1142_v32 }
  0x4b   : > { %2019 = vmatmul.mubr.msk.bf16.vlgmr.msra.gmra.mxu0 %vm259_vm0, %v2362_v6 }
  0x50   : > { %2014 = vmatmul.mubr.msk.bf16.vlgmr.msra.gmra.mxu1 %vm259_vm0, %v2362_v6 }
  0x51   : > { %1158 = vmatpush1.bf16.msra.mxu1 %v1141_v35  ;;  %1175 = vmatprep.mubr.bf16.mxu1 %v2298_v0 }
  0x58   : > { %2024 = vmatmul.mubr.msk.bf16.vlgmr.msra.gmra.mxu1 %vm259_vm0, %v2362_v6 }
  0xd8   : > { %v2470_v36 = vpop.f32.mrf.mxu1 }
  0xda   : > { %v2472_v37 = vpop.f32.mrf.mxu1 }
  0xdb   : > { %v2474_v38 = vpop.f32.mrf.mxu0 }
  0xdc   : > { %v2476_v39 = vpop.f32.mrf.mxu1 }
  0xdd   : > { %v2478_v40 = vpop.f32.mrf.mxu0 }
  0xde   : > { %v2480_v41 = vpop.f32.mrf.mxu1 }
  0xdf   : > { %3130 = vst [vmem:[#allocation3_spill] sm:$0xff] %v2480_v41  ;;  %v2482_v42 = vpop.f32.mrf.mxu0 }
  0xe0   : > { %3131 = vst [vmem:[#allocation4_spill] sm:$0xff] %v2482_v42  ;;  %v2484_v43 = vpop.f32.mrf.mxu1 }
  0xe1   : > { %v2486_v0 = vpop.f32.mrf.mxu0  ;;  %v365_v57 = vmax.f32 %v2470_v36, %v2484_v43 }
  0xe2   : > { %3132 = vst [vmem:[#allocation5_spill] sm:$0xff] %v2486_v0  ;;  %v2488_v44 = vpop.f32.mrf.mxu1 }
  0xe3   : > { %v2490_v6 = vpop.f32.mrf.mxu0  ;;  %v424_v62 = vmax.f32 %v365_v57, %v2474_v38  ;;  %v366_v9 = vmax.f32 %v2472_v37, %v2488_v44 }
  0xe4   : > { %v2492_v45 = vpop.f32.mrf.mxu1 }
  0xe5   : > { %v2494_v46 = vpop.f32.mrf.mxu0  ;;  %v425_v15 = vmax.f32 %v366_v9, %v2478_v40  ;;  %v367_v32 = vmax.f32 %v2476_v39, %v2492_v45 }
  0xe6   : > { %v2496_v47 = vpop.f32.mrf.mxu1 }
  0xe7   : > { %3133 = vst [vmem:[#allocation6_spill] sm:$0xff] %v2496_v47  ;;  %v2498_v48 = vpop.f32.mrf.mxu0 }
  0xe8   : > { %3134 = vst [vmem:[#allocation7_spill] sm:$0xff] %v2498_v48  ;;  %v2500_v49 = vpop.f32.mrf.mxu1 }
  0xe9   : > { %v2502_v50 = vpop.f32.mrf.mxu0  ;;  %v483_v2 = vmax.f32 %v424_v62, %v2500_v49 }
  0xea   : > { %3135 = vst [vmem:[#allocation8_spill] sm:$0xff] %v2502_v50  ;;  %v2504_v51 = vpop.f32.mrf.mxu1 }
  0xeb   : > { %v2506_v52 = vpop.f32.mrf.mxu0  ;;  %v542_v8 = vmax.f32 %v483_v2, %v2490_v6  ;;  %v484_v19 = vmax.f32 %v425_v15, %v2504_v51 }
  0xec   : > { %v2508_v53 = vpop.f32.mrf.mxu1 }
  0xed   : > { %3136 = vst [vmem:[#allocation9_spill] sm:$0xff] %v2508_v53  ;;  %v2510_v54 = vpop.f32.mrf.mxu0  ;;  %v543_v24 = vmax.f32 %v484_v19, %v2494_v46  ;;  %v368_v19 = vmax.f32 %v2480_v41, %v2496_v47 }
  0xee   : > { %v2512_v55 = vpop.f32.mrf.mxu1 }
  0xef   : > { %3137 = vst [vmem:[#allocation10_spill] sm:$0xff] %v2512_v55  ;;  %v2514_v56 = vpop.f32.mrf.mxu0  ;;  %v427_v47 = vmax.f32 %v368_v19, %v2486_v0 }
  0xf0   : > { %v2518_v58 = vpop.f32.mrf.mxu1 }
  0xf1   : > { %v2520_v59 = vpop.f32.mrf.mxu0  ;;  %v601_v12 = vmax.f32 %v542_v8, %v2518_v58  ;;  %v426_v8 = vmax.f32 %v367_v32, %v2482_v42 }
  0xf2   : > { %v2522_v60 = vpop.f32.mrf.mxu1 }
  0xf3   : > { %v2524_v61 = vpop.f32.mrf.mxu0  ;;  %v660_v18 = vmax.f32 %v601_v12, %v2506_v52  ;;  %v602_v27 = vmax.f32 %v543_v24, %v2522_v60 }
  0xf4   : > { %v2527_v63 = vpop.f32.mrf.mxu1 }
  0xf5   : > { %v2529_v1 = vpop.f32.mrf.mxu0  ;;  %v661_v33 = vmax.f32 %v602_v27, %v2510_v54 }
  0xf6   : > { %v2532_v3 = vpop.f32.mrf.mxu1 }
  0xf7   : > { %v2534_v4 = vpop.f32.mrf.mxu0 }
  0xf8   : > { %v2536_v5 = vpop.f32.mrf.mxu1 }
  0xf9   : > { %v2538_v7 = vpop.f32.mrf.mxu0  ;;  %v719_v21 = vmax.f32 %v660_v18, %v2536_v5  ;;  %v485_v18 = vmax.f32 %v426_v8, %v2508_v53 }
  0xfa   : > { %v2543_v10 = vpop.f32.mrf.mxu1 }
  0xfb   : > { %v2545_v11 = vpop.f32.mrf.mxu0  ;;  %v778_v26 = vmax.f32 %v719_v21, %v2524_v61  ;;  %v720_v62 = vmax.f32 %v661_v33, %v2543_v10  ;;  %v3116_v33 = vmov 0.0  }
  0xfc   : > { %v2548_v13 = vpop.f32.mrf.mxu1  ;;  %1811 = vmatprep.mubr.f32.mxu0 %v3116_v33 }
  0xfd   : > { %3138 = vst [vmem:[#allocation11_spill] sm:$0xff] %v2548_v13  ;;  %v2550_v14 = vpop.f32.mrf.mxu0  ;;  %v779_v21 = vmax.f32 %v720_v62, %v2529_v1 }
  0xfe   : > { %v2553_v16 = vpop.f32.mrf.mxu1 }
  0xff   : > { %v2555_v17 = vpop.f32.mrf.mxu0 }
 0x100   : > { %v2559_v20 = vpop.f32.mrf.mxu1 }
 0x101   : > { %v2564_v23 = vpop.f32.mrf.mxu0  ;;  %v837_v30 = vmax.f32 %v778_v26, %v2559_v20 }
 0x102   : > { %v2562_v22 = vpop.f32.mrf.mxu1 }
 0x103   : > { %v2573_v29 = vpop.f32.mrf.mxu0  ;;  %v896_v57 = vmax.f32 %v837_v30, %v2545_v11  ;;  %v838_v27 = vmax.f32 %v779_v21, %v2562_v22 }
 0x104   : > { %v2567_v25 = vpop.f32.mrf.mxu1 }
 0x105   : > { %v2583_v35 = vpop.f32.mrf.mxu0  ;;  %v897_v21 = vmax.f32 %v838_v27, %v2550_v14 }
 0x106   : > { %v2571_v28 = vpop.f32.mrf.mxu1 }
 0x107   : > { %v2591_v12 = vpop.f32.mrf.mxu0 }
 0x108   : > { %v2576_v31 = vpop.f32.mrf.mxu1 }
 0x109   : > { %v955_v9 = vmax.f32 %v896_v57, %v2576_v31  ;;  %v2603_v30 = vpop.f32.mrf.mxu0  ;;  %v544_v57 = vmax.f32 %v485_v18, %v2498_v48 }
 0x10a   : > { %v2581_v34 = vpop.f32.mrf.mxu1 }
 0x10b   : > { %v1014_v26 = vmax.f32 %v955_v9, %v2573_v29  ;;  %v603_v41 = vmax.f32 %v544_v57, %v2527_v63  ;;  %v486_v9 = vmax.f32 %v427_v47, %v2512_v55  ;;  %v2616_v53 = vpop.f32.mrf.mxu0  ;;  %v956_v18 = vmax.f32 %v897_v21, %v2581_v34 }
 0x10c   : > { %v2587_v2 = vpop.f32.mrf.mxu1 }
 0x10d   : > { %v662_v19 = vmax.f32 %v603_v41, %v2514_v56  ;;  %v545_v57 = vmax.f32 %v486_v9, %v2502_v50  ;;  %v1015_v41 = vmax.f32 %v956_v18, %v2583_v35  ;;  %v2650_v18 = vpop.f32.mrf.mxu0 }
 0x10e   : > { %v2593_v15 = vpop.f32.mrf.mxu1 }
 0x10f   : > { %v721_v47 = vmax.f32 %v662_v19, %v2548_v13  ;;  %v604_v21 = vmax.f32 %v545_v57, %v2532_v3 }
 0x110   : > { %v2599_v24 = vpop.f32.mrf.mxu1 }
 0x111   : > { %v1073_v8 = vmax.f32 %v1014_v26, %v2599_v24 }
 0x112   : > { %v2605_v32 = vpop.f32.mrf.mxu1 }
 0x113   : > { %v1132_v33 = vmax.f32 %v1073_v8, %v2616_v53  ;;  %v1074_v19 = vmax.f32 %v1015_v41, %v2605_v32 }
 0x114   : > { %v2611_v62 = vpop.f32.mrf.mxu1 }
 0x116   : > { %v2618_v42 = vpop.f32.mrf.mxu1 }
 0x118   : > { %v2622_v48 = vpop.f32.mrf.mxu1 }
 0x119   : > { %v2626_v26 = vmax.f32 %v1132_v33, %v2622_v48 }
 0x11b   : > { %v1199_v27 = vsub.f32 %v2470_v36, %v2626_v26  ;;  %v1231_v55 = vsub.f32 %v2484_v43, %v2626_v26  ;;  %v1263_v8 = vsub.f32 %v2474_v38, %v2626_v26  ;;  %v1295_v33 = vsub.f32 %v2500_v49, %v2626_v26  ;;  %v244_v38 = vld [vmem:[%s3110_s3] sm:$0xff]  ;;  %v246_v49 = vld [vmem:[%s3110_s3 + $0x10] sm:$0xff] }
 0x11c   : > { %v780_v36 = vmax.f32 %v721_v47, %v2534_v4  ;;  %v663_v43 = vmax.f32 %v604_v21, %v2520_v59  ;;  %v1327_v57 = vsub.f32 %v2490_v6, %v2626_v26  ;;  %1717 = vperm.xlu0 %2119, %v244_v38   ;;  %1727 = vperm.xlu1 %2120, %v246_v49   ;;  %v245_v21 = vld [vmem:[%s3110_s3 + $0x8] sm:$0xff]  ;;  %v247_v6 = vld [vmem:[%s3110_s3 + $0x18] sm:$0xff] }
 0x11d   : > { %v1203_v0 = vmul.f32 1.442695, %v1199_v27  ;;  %v1235_v9 = vmul.f32 1.442695, %v1231_v55  ;;  %v1267_v50 = vmul.f32 1.442695, %v1263_v8  ;;  %v1133_v27 = vmax.f32 %v1074_v19, %v2650_v18 }
 0x11e   : > { %v1299_v13 = vmul.f32 1.442695, %v1295_v33  ;;  %v839_v55 = vmax.f32 %v780_v36, %v2567_v25  ;;  %v722_v47 = vmax.f32 %v663_v43, %v2553_v16  ;;  %v1359_v8 = vsub.f32 %v2518_v58, %v2626_v26 }
 0x11f   : > { %2122 = vpow2.f32 %v1203_v0  ;;  %v2654_v0 = vpop.f32.mrf.mxu1  ;;  %v1391_v41 = vsub.f32 %v2506_v52, %v2626_v26  ;;  %v1423_v33 = vsub.f32 %v2536_v5, %v2626_v26  ;;  %v1455_v19 = vsub.f32 %v2524_v61, %v2626_v26 }
 0x120   : > { %2124 = vpow2.f32 %v1235_v9  ;;  %v898_v58 = vmax.f32 %v839_v55, %v2555_v17  ;;  %v1331_v9 = vmul.f32 1.442695, %v1327_v57  ;;  %1722 = vperm.xlu0 %2119, %v245_v21   ;;  %1732 = vperm.xlu1 %2120, %v247_v6   ;;  %v781_v36 = vmax.f32 %v722_v47, %v2538_v7 }
 0x121   : > { %2126 = vpow2.f32 %v1267_v50  ;;  %v2671_v50 = vmax.f32 %v1133_v27, %v2654_v0  ;;  %v1363_v43 = vmul.f32 1.442695, %v1359_v8  ;;  %v1487_v52 = vsub.f32 %v2559_v20, %v2626_v26 }
 0x122   : > { %2128 = vpow2.f32 %v1299_v13  ;;  %v957_v13 = vmax.f32 %v898_v58, %v2587_v2  ;;  %v1395_v5 = vmul.f32 1.442695, %v1391_v41  ;;  %v840_v49 = vmax.f32 %v781_v36, %v2571_v28 }
 0x123   : > { %v1200_v38 = vsub.f32 %v2472_v37, %v2671_v50  ;;  %v1427_v55 = vmul.f32 1.442695, %v1423_v33  ;;  %v1232_v61 = vsub.f32 %v2488_v44, %v2671_v50  ;;  %2130 = vpow2.f32 %v1331_v9 }
 0x124   : > { %v1459_v57 = vmul.f32 1.442695, %v1455_v19  ;;  %v1519_v47 = vsub.f32 %v2545_v11, %v2626_v26  ;;  %2132 = vpow2.f32 %v1363_v43  ;;  %v1491_v27 = vmul.f32 1.442695, %v1487_v52 }
 0x125   : > { %v1551_v20 = vsub.f32 %v2576_v31, %v2626_v26  ;;  %v1016_v8 = vmax.f32 %v957_v13, %v2591_v12  ;;  %2134 = vpow2.f32 %v1395_v5  ;;  %v1205_v37 = vmul.f32 1.442695, %v1200_v38  ;;  %v2711_v5 = vpop.f32.mrf.mxu0 }
 0x126   : > { %v1264_v21 = vsub.f32 %v2478_v40, %v2671_v50  ;;  %v899_v44 = vmax.f32 %v840_v49, %v2564_v23  ;;  %2136 = vpow2.f32 %v1427_v55  ;;  %v1583_v11 = vsub.f32 %v2573_v29, %v2626_v26  ;;  %v2716_v55 = vpop.f32.mrf.mxu1 }
 0x127   : > { %v1237_v41 = vmul.f32 1.442695, %v1232_v61  ;;  %v1075_v31 = vmax.f32 %v1016_v8, %v2611_v62  ;;  %2138 = vpow2.f32 %v1459_v57  ;;  %v1523_v58 = vmul.f32 1.442695, %v1519_v47 }
 0x128   : > { %v1615_v9 = vsub.f32 %v2599_v24, %v2626_v26  ;;  %2140 = vpow2.f32 %v1491_v27  ;;  %v1555_v19 = vmul.f32 1.442695, %v1551_v20  ;;  %v1647_v36 = vsub.f32 %v2616_v53, %v2626_v26 }
 0x129   : > { %v958_v29 = vmax.f32 %v899_v44, %v2593_v15  ;;  %2142 = vpow2.f32 %v1205_v37  ;;  %v1269_v52 = vmul.f32 1.442695, %v1264_v21  ;;  %v1296_v13 = vsub.f32 %v2504_v51, %v2671_v50 }
 0x12a   : > { %v1587_v38 = vmul.f32 1.442695, %v1583_v11  ;;  %v1679_v49 = vsub.f32 %v2622_v48, %v2626_v26  ;;  %2144 = vpow2.f32 %v1237_v41  ;;  %v1134_v61 = vmax.f32 %v1075_v31, %v2711_v5 }
 0x12b   : > { %2146 = vpow2.f32 %v1523_v58  ;;  %v1619_v57 = vmul.f32 1.442695, %v1615_v9  ;;  %v1328_v51 = vsub.f32 %v2494_v46, %v2671_v50  ;;  %v1651_v27 = vmul.f32 1.442695, %v1647_v36 }
 0x12c   : > { %v2692_v6 = vpop.eup %2122  ;;  %2148 = vpow2.f32 %v1555_v19  ;;  %v1360_v20 = vsub.f32 %v2522_v60, %v2671_v50  ;;  %v1301_v48 = vmul.f32 1.442695, %v1296_v13  ;;  %v1392_v26 = vsub.f32 %v2510_v54, %v2671_v50 }
 0x12d   : > { %v2697_v33 = vpop.eup %2124  ;;  %2150 = vpow2.f32 %v1269_v52  ;;  %v2729_v8 = vmax.f32 %v1134_v61, %v2716_v55  ;;  %v1683_v37 = vmul.f32 1.442695, %v1679_v49  ;;  %v1424_v46 = vsub.f32 %v2543_v10, %v2671_v50 }
 0x12e   : > { %v1243_v40 = vadd.f32 %v2697_v33, %v2692_v6  ;;  %v2706_v43 = vpop.eup %2126  ;;  %2152 = vpow2.f32 %v1587_v38  ;;  %v1017_v21 = vmax.f32 %v958_v29, %v2603_v30  ;;  %v1333_v44 = vmul.f32 1.442695, %v1328_v51  ;;  %v3144_v38 = vld [vmem:[#allocation4_spill] sm:$0xff] }
 0x12f   : > { %v2718_v53 = vpop.eup %2128  ;;  %2154 = vpow2.f32 %v1619_v57  ;;  %v1456_v60 = vsub.f32 %v2529_v1, %v2671_v50  ;;  %v1365_v41 = vmul.f32 1.442695, %v1360_v20  ;;  %v1488_v54 = vsub.f32 %v2562_v22, %v2671_v50  ;;  %v3145_v20 = vld [vmem:[#allocation9_spill] sm:$0xff] }
 0x130   : > { %v1275_v24 = vadd.f32 %v2706_v43, %v1243_v40  ;;  %v2736_v11 = vpop.eup %2130  ;;  %2156 = vpow2.f32 %v1651_v27  ;;  %v1076_v58 = vmax.f32 %v1017_v21, %v2618_v42  ;;  %v1397_v10 = vmul.f32 1.442695, %v1392_v26  ;;  %v3146_v21 = vld [vmem:[#allocation7_spill] sm:$0xff] }
 0x131   : > { %3139 = vst [vmem:[#allocation12_spill] sm:$0xff] %v2736_v11  ;;  %v2740_v31 = vpop.eup %2132  ;;  %2158 = vpow2.f32 %v1301_v48  ;;  %v1201_v9 = vsub.f32 %v2476_v39, %v2729_v8  ;;  %v1429_v1 = vmul.f32 1.442695, %v1424_v46  ;;  %v1233_v19 = vsub.f32 %v2492_v45, %v2729_v8  ;;  %v2757_v39 = vpop.f32.mrf.mxu0 }
 0x132   : > { %v1307_v47 = vadd.f32 %v2718_v53, %v1275_v24  ;;  %3140 = vst [vmem:[#allocation13_spill] sm:$0xff] %v2740_v31  ;;  %v2745_v40 = vpop.eup %2134  ;;  %2160 = vpow2.f32 %v1683_v37  ;;  %v1461_v22 = vmul.f32 1.442695, %v1456_v60  ;;  %v1520_v29 = vsub.f32 %v2550_v14, %v2671_v50 }
 0x133   : > { %3141 = vst [vmem:[#allocation14_spill] sm:$0xff] %v2745_v40  ;;  %v2749_v36 = vpop.eup %2136  ;;  %2162 = vpow2.f32 %v1333_v44  ;;  %v1552_v52 = vsub.f32 %v2581_v34, %v2671_v50  ;;  %v1493_v24 = vmul.f32 1.442695, %v1488_v54  ;;  %v1265_v49 = vsub.f32 %v3144_v38, %v2729_v8  ;;  %v3147_v38 = vld [vmem:[#allocation11_spill] sm:$0xff] }
 0x134   : > { %3142 = vst [vmem:[#allocation15_spill] sm:$0xff] %v2749_v36  ;;  %v2755_v13 = vpop.eup %2138  ;;  %2164 = vpow2.f32 %v1365_v41  ;;  %v1135_v61 = vmax.f32 %v1076_v58, %v2757_v39  ;;  %v1339_v57 = vadd.f32 %v2736_v11, %v1307_v47  ;;  %v1207_v14 = vmul.f32 1.442695, %v1201_v9 }
 0x135   : > { %3143 = vst [vmem:[#allocation16_spill] sm:$0xff] %v2755_v13  ;;  %v2761_v45 = vpop.eup %2140  ;;  %2166 = vpow2.f32 %v1397_v10  ;;  %v1584_v34 = vsub.f32 %v2583_v35, %v2671_v50  ;;  %v1239_v27 = vmul.f32 1.442695, %v1233_v19  ;;  %v1297_v48 = vsub.f32 %v3145_v20, %v2729_v8 }
 0x136   : > { %v2765_v51 = vpop.eup %2142  ;;  %2168 = vpow2.f32 %v1429_v1  ;;  %v1525_v37 = vmul.f32 1.442695, %v1520_v29  ;;  %v1557_v46 = vmul.f32 1.442695, %v1552_v52  ;;  %v1329_v47 = vsub.f32 %v3146_v21, %v2729_v8  ;;  %v2792_v29 = vpop.f32.mrf.mxu1 }
 0x137   : > { %v2771_v26 = vpop.eup %2144  ;;  %2170 = vpow2.f32 %v1461_v22  ;;  %v1616_v35 = vsub.f32 %v2605_v32, %v2671_v50  ;;  %v1271_v41 = vmul.f32 1.442695, %v1265_v49  ;;  %v1371_v58 = vadd.f32 %v2740_v31, %v1339_v57 }
 0x138   : > { %v2775_v44 = vpop.eup %2146  ;;  %v1244_v60 = vadd.f32 %v2771_v26, %v2765_v51  ;;  %2172 = vpow2.f32 %v1493_v24  ;;  %v1648_v10 = vsub.f32 %v2650_v18, %v2671_v50  ;;  %v1680_v9 = vsub.f32 %v2654_v0, %v2671_v50 }
 0x139   : > { %v2781_v54 = vpop.eup %2148  ;;  %2174 = vpow2.f32 %v1207_v14  ;;  %v1589_v19 = vmul.f32 1.442695, %v1584_v34  ;;  %v1303_v22 = vmul.f32 1.442695, %v1297_v48  ;;  %v1361_v32 = vsub.f32 %v2527_v63, %v2729_v8 }
 0x13a   : > { %v2788_v1 = vpop.eup %2150  ;;  %2176 = vpow2.f32 %v1239_v27  ;;  %v1335_v18 = vmul.f32 1.442695, %v1329_v47  ;;  %v1393_v0 = vsub.f32 %v2514_v56, %v2729_v8  ;;  %v1425_v49 = vsub.f32 %v3147_v38, %v2729_v8 }
 0x13b   : > { %v2794_v52 = vpop.eup %2152  ;;  %v1276_v24 = vadd.f32 %v2788_v1, %v1244_v60  ;;  %2178 = vpow2.f32 %v1525_v37  ;;  %v1457_v63 = vsub.f32 %v2534_v4, %v2729_v8  ;;  %v1489_v57 = vsub.f32 %v2567_v25, %v2729_v8 }
 0x13c   : > { %v2799_v50 = vpop.eup %2154  ;;  %2180 = vpow2.f32 %v1271_v41  ;;  %v1403_v34 = vadd.f32 %v2745_v40, %v1371_v58  ;;  %v1621_v27 = vmul.f32 1.442695, %v1616_v35  ;;  %v2811_v56 = vmax.f32 %v1135_v61, %v2792_v29 }
 0x13d   : > { %v2807_v14 = vpop.eup %2156  ;;  %2182 = vpow2.f32 %v1557_v46  ;;  %v1653_v48 = vmul.f32 1.442695, %v1648_v10  ;;  %v1685_v37 = vmul.f32 1.442695, %v1680_v9  ;;  %v1367_v21 = vmul.f32 1.442695, %v1361_v32 }
 0x13e   : > { %3148 = vst [vmem:[#allocation4_spill] sm:$0xff] %v2807_v14  ;;  %v2813_v20 = vpop.eup %2158  ;;  %2184 = vpow2.f32 %v1303_v22  ;;  %v1399_v25 = vmul.f32 1.442695, %v1393_v0  ;;  %v1521_v60 = vsub.f32 %v2555_v17, %v2729_v8  ;;  %v1431_v61 = vmul.f32 1.442695, %v1425_v49  ;;  %v3150_v32 = vld [vmem:[#allocation3_spill] sm:$0xff] }
 0x13f   : > { %v2815_v47 = vpop.eup %2160  ;;  %v1308_v4 = vadd.f32 %v2813_v20, %v1276_v24  ;;  %2186 = vpow2.f32 %v1589_v19  ;;  %v1463_v35 = vmul.f32 1.442695, %v1457_v63  ;;  %v1495_v41 = vmul.f32 1.442695, %v1489_v57  ;;  %v3153_v63 = vld [vmem:[#allocation10_spill] sm:$0xff] }
 0x140   : > { %3149 = vst [vmem:[#allocation9_spill] sm:$0xff] %v2815_v47  ;;  %v2820_v46 = vpop.eup %2162  ;;  %2188 = vpow2.f32 %v1335_v18  ;;  %v1435_v10 = vadd.f32 %v2749_v36, %v1403_v34  ;;  %v1553_v9 = vsub.f32 %v2587_v2, %v2729_v8  ;;  %v1585_v19 = vsub.f32 %v2591_v12, %v2729_v8  ;;  %v3151_v18 = vld [vmem:[#allocation6_spill] sm:$0xff]  ;;  %v3152_v12 = vld [vmem:[#allocation5_spill] sm:$0xff] }
 0x141   : > { %v2822_v58 = vpop.eup %2164  ;;  %2190 = vpow2.f32 %v1621_v27  ;;  %v1617_v17 = vsub.f32 %v2611_v62, %v2729_v8  ;;  %v1202_v24 = vsub.f32 %v3150_v32, %v2811_v56  ;;  %v1234_v0 = vsub.f32 %v3151_v18, %v2811_v56  ;;  %v2026_v32 = vld [vmem:[%s2353_s22 + $0x28] sm:$0xff]  ;;  %v1217_v36 = vld [vmem:[%s2353_s22 + $0x10] sm:$0xff] }
 0x142   : > { %v2829_v22 = vpop.eup %2166  ;;  %2192 = vpow2.f32 %v1367_v21  ;;  %v1340_v2 = vadd.f32 %v2820_v46, %v1308_v4  ;;  %v1266_v49 = vsub.f32 %v3152_v12, %v2811_v56  ;;  %v1298_v57 = vsub.f32 %v3153_v63, %v2811_v56  ;;  %v1216_v4 = vld [vmem:[%s2353_s22 + $0x8] sm:$0xff] }
 0x143   : > { %v2837_v38 = vpop.eup %2168  ;;  %2194 = vpow2.f32 %v1653_v48  ;;  %v1527_v34 = vmul.f32 1.442695, %v1521_v60  ;;  %v1649_v27 = vsub.f32 %v2711_v5, %v2729_v8  ;;  %v1681_v21 = vsub.f32 %v2716_v55, %v2729_v8 }
 0x144   : > { %v2844_v62 = vpop.eup %2170  ;;  %2196 = vpow2.f32 %v1399_v25  ;;  %v1467_v18 = vadd.f32 %v2755_v13, %v1435_v10  ;;  %v2855_v12 = vmul.f32 1.442695, %v1553_v9  ;;  %v2857_v63 = vmul.f32 1.442695, %v1585_v19  ;;  %v2027_v25 = vld [vmem:[%s2353_s22 + $0x30] sm:$0xff]  ;;  %v3154_v10 = vld [vmem:[#allocation8_spill] sm:$0xff] }
 0x145   : > { %v2852_v48 = vpop.eup %2172  ;;  %2198 = vpow2.f32 %v1685_v37  ;;  %v2861_v47 = vmul.f32 1.442695, %v1617_v17  ;;  %v1209_v5 = vmul.f32 1.442695, %v1202_v24  ;;  %v1241_v40 = vmul.f32 1.442695, %v1234_v0 }
 0x146   : > { %v2175_v60 = vpop.eup %2174  ;;  %2200 = vpow2.f32 %v1431_v61  ;;  %v1372_v8 = vadd.f32 %v2822_v58, %v1340_v2  ;;  %v1273_v31 = vmul.f32 1.442695, %v1266_v49  ;;  %v1305_v14 = vmul.f32 1.442695, %v1298_v57 }
 0x147   : > { %v2177_v55 = vpop.eup %2176  ;;  %v1330_v37 = vsub.f32 %v3154_v10, %v2811_v56  ;;  %2202 = vpow2.f32 %v1463_v35  ;;  %v1221_v13 = vmul.f32 %v2175_v60, %v1217_v36  ;;  %v1220_v11 = vmul.f32 %v2765_v51, %v1216_v4  ;;  %v2030_v4 = vld [vmem:[%s2353_s22 + $0x48] sm:$0xff] }
 0x148   : > { %v2866_v9 = vpop.eup %2178  ;;  %v1245_v19 = vadd.f32 %v2177_v55, %v2175_v60  ;;  %2204 = vpow2.f32 %v1495_v41  ;;  %v1362_v17 = vsub.f32 %v2532_v3, %v2811_v56  ;;  %v1253_v24 = vmul.f32 %v2177_v55, %v2027_v25  ;;  %v2031_v3 = vld [vmem:[%s2353_s22 + $0x50] sm:$0xff] }
 0x149   : > { %v2181_v61 = vpop.eup %2180  ;;  %v1252_v0 = vmul.f32 %v2771_v26, %v2026_v32  ;;  %v1499_v49 = vadd.f32 %v2761_v45, %v1467_v18  ;;  %v2875_v10 = vmul.f32 1.442695, %v1649_v27  ;;  %2206 = vpow2.f32 %v1209_v5 }
 0x14a   : > { %v2872_v2 = vpop.eup %2182  ;;  %v1277_v57 = vadd.f32 %v2181_v61, %v1245_v19  ;;  %v1404_v51 = vadd.f32 %v2829_v22, %v1372_v8  ;;  %2208 = vpow2.f32 %v1241_v40  ;;  %v1337_v35 = vmul.f32 1.442695, %v1330_v37  ;;  %v2034_v19 = vld [vmem:[%s2353_s22 + $0x68] sm:$0xff] }
 0x14b   : > { %v2185_v36 = vpop.eup %2184  ;;  %v1394_v41 = vsub.f32 %v2520_v59, %v2811_v56  ;;  %2210 = vpow2.f32 %v1273_v31  ;;  %v1257_v32 = vadd.f32 %v1253_v24, %v1221_v13  ;;  %v1256_v18 = vadd.f32 %v1252_v0, %v1220_v11 }
 0x14c   : > { %v2882_v25 = vpop.eup %2186  ;;  %v1309_v26 = vadd.f32 %v2185_v36, %v1277_v57  ;;  %v2884_v60 = vmul.f32 1.442695, %v1681_v21  ;;  %2212 = vpow2.f32 %v1305_v14  ;;  %v1369_v5 = vmul.f32 1.442695, %v1362_v17  ;;  %v2035_v21 = vld [vmem:[%s2353_s22 + $0x70] sm:$0xff] }
 0x14d   : > { %v2189_v27 = vpop.eup %2188  ;;  %v1426_v40 = vsub.f32 %v2553_v16, %v2811_v56  ;;  %2214 = vpow2.f32 %v1527_v34  ;;  %v1285_v8 = vmul.f32 %v2181_v61, %v2031_v3  ;;  %v1284_v37 = vmul.f32 %v2788_v1, %v2030_v4 }
 0x14e   : > { %v2888_v55 = vpop.eup %2190  ;;  %v1341_v59 = vadd.f32 %v2189_v27, %v1309_v26  ;;  %v1531_v11 = vadd.f32 %v2775_v44, %v1499_v49  ;;  %2216 = vpow2.f32 %v1337_v35  ;;  %v1401_v13 = vmul.f32 1.442695, %v1394_v41  ;;  %v2039_v26 = vld [vmem:[%s2353_s22 + $0x90] sm:$0xff] }
 0x14f   : > { %v2891_v31 = vpop.eup %2192  ;;  %v1458_v14 = vsub.f32 %v2538_v7, %v2811_v56  ;;  %v1436_v16 = vadd.f32 %v2837_v38, %v1404_v51  ;;  %v1289_v61 = vadd.f32 %v1285_v8, %v1257_v32  ;;  %v1288_v24 = vadd.f32 %v1284_v37, %v1256_v18  ;;  %v2038_v32 = vld [vmem:[%s2353_s22 + $0x88] sm:$0xff] }
 0x150   : > { %v2898_v17 = vpop.eup %2194  ;;  %v1373_v34 = vadd.f32 %v2891_v31, %v1341_v59  ;;  %2218 = vpow2.f32 %v1369_v5  ;;  %v1433_v0 = vmul.f32 1.442695, %v1426_v40  ;;  %v1490_v49 = vsub.f32 %v2571_v28, %v2811_v56 }
 0x151   : > { %v2902_v1 = vpop.eup %2196  ;;  %v1522_v7 = vsub.f32 %v2564_v23, %v2811_v56  ;;  %2220 = vpow2.f32 %v2855_v12  ;;  %v1317_v35 = vmul.f32 %v2185_v36, %v2035_v21  ;;  %v1316_v41 = vmul.f32 %v2813_v20, %v2034_v19 }
 0x152   : > { %v2908_v57 = vpop.eup %2198  ;;  %v1405_v51 = vadd.f32 %v2902_v1, %v1373_v34  ;;  %v2916_v4 = vadd.f32 %v2781_v54, %v1531_v11  ;;  %2222 = vpow2.f32 %v1401_v13  ;;  %v1465_v28 = vmul.f32 1.442695, %v1458_v14  ;;  %v2028_v13 = vld [vmem:[%s2353_s22 + $0x38] sm:$0xff] }
 0x153   : > { %v2913_v3 = vpop.eup %2200  ;;  %v1554_v23 = vsub.f32 %v2593_v15, %v2811_v56  ;;  %v1468_v18 = vadd.f32 %v2844_v62, %v1436_v16  ;;  %v1321_v36 = vadd.f32 %v1317_v35, %v1289_v61  ;;  %v1320_v20 = vadd.f32 %v1316_v41, %v1288_v24  ;;  %v1218_v15 = vld [vmem:[%s2353_s22 + $0x18] sm:$0xff]  ;;  %v2043_v61 = vld [vmem:[%s2353_s22 + $0xb0] sm:$0xff]  ;;  %v2042_v24 = vld [vmem:[%s2353_s22 + $0xa8] sm:$0xff] }
 0x154   : > { %v1437_v12 = vadd.f32 %v2913_v3, %v1405_v51  ;;  %v2924_v5 = vpop.eup %2202  ;;  %2224 = vpow2.f32 %v1433_v0  ;;  %v1497_v40 = vmul.f32 1.442695, %v1490_v49  ;;  %v1529_v59 = vmul.f32 1.442695, %v1522_v7  ;;  %v2032_v7 = vld [vmem:[%s2353_s22 + $0x58] sm:$0xff] }
 0x155   : > { %v1586_v8 = vsub.f32 %v2603_v30, %v2811_v56  ;;  %v2929_v37 = vpop.eup %2204  ;;  %2226 = vpow2.f32 %v2857_v63  ;;  %v1349_v14 = vmul.f32 %v2189_v27, %v2039_v26  ;;  %v1348_v21 = vmul.f32 %v2820_v46, %v2038_v32  ;;  %v2036_v26 = vld [vmem:[%s2353_s22 + $0x78] sm:$0xff] }
 0x156   : > { %v1469_v11 = vadd.f32 %v2924_v5, %v1437_v12  ;;  %v2207_v19 = vpop.eup %2206  ;;  %2228 = vpow2.f32 %v1465_v28  ;;  %v1561_v16 = vmul.f32 1.442695, %v1554_v23  ;;  %v1618_v34 = vsub.f32 %v2618_v42, %v2811_v56 }
 0x157   : > { %v1650_v30 = vsub.f32 %v2757_v39, %v2811_v56  ;;  %v2209_v0 = vpop.eup %2208  ;;  %v1500_v49 = vadd.f32 %v2852_v48, %v1468_v18  ;;  %v1222_v63 = vmul.f32 %v2207_v19, %v1218_v15  ;;  %v1353_v27 = vadd.f32 %v1349_v14, %v1321_v36  ;;  %v2047_v15 = vld [vmem:[%s2353_s22 + $0xd0] sm:$0xff] }
 0x158   : > { %v1352_v51 = vadd.f32 %v1348_v21, %v1320_v20  ;;  %v2211_v46 = vpop.eup %2210  ;;  %v1246_v35 = vadd.f32 %v2209_v0, %v2207_v19  ;;  %2230 = vpow2.f32 %v1497_v40  ;;  %v1682_v42 = vsub.f32 %v2792_v29, %v2811_v56  ;;  %v2046_v29 = vld [vmem:[%s2353_s22 + $0xc8] sm:$0xff] }
 0x159   : > { %v1254_v41 = vmul.f32 %v2209_v0, %v2028_v13  ;;  %v2213_v39 = vpop.eup %2212  ;;  %v1501_v28 = vadd.f32 %v2929_v37, %v1469_v11  ;;  %v1593_v23 = vmul.f32 1.442695, %v1586_v8  ;;  %v1381_v32 = vmul.f32 %v2891_v31, %v2043_v61  ;;  %v2040_v11 = vld [vmem:[%s2353_s22 + $0x98] sm:$0xff] }
 0x15a   : > { %v1380_v18 = vmul.f32 %v2822_v58, %v2042_v24  ;;  %v2949_v12 = vpop.eup %2214  ;;  %2232 = vpow2.f32 %v2861_v47  ;;  %v1278_v36 = vadd.f32 %v2211_v46, %v1246_v35  ;;  %v1286_v40 = vmul.f32 %v2211_v46, %v2032_v7  ;;  %v2050_v46 = vld [vmem:[%s2353_s22 + $0xe8] sm:$0xff] }
 0x15b   : > { %v1258_v20 = vadd.f32 %v1254_v41, %v1222_v63  ;;  %v2217_v56 = vpop.eup %2216  ;;  %v1532_v13 = vadd.f32 %v2866_v9, %v1500_v49  ;;  %2234 = vpow2.f32 %v1529_v59  ;;  %v1385_v8 = vadd.f32 %v1381_v32, %v1353_v27 }
 0x15c   : > { %v1384_v14 = vadd.f32 %v1380_v18, %v1352_v51  ;;  %v1310_v31 = vadd.f32 %v2213_v39, %v1278_v36  ;;  %v1625_v58 = vmul.f32 1.442695, %v1618_v34  ;;  %v1318_v19 = vmul.f32 %v2213_v39, %v2036_v26  ;;  %v2051_v51 = vld [vmem:[%s2353_s22 + $0xf0] sm:$0xff]  ;;  %v2258_v39 = vld [vmem:[%s2353_s22 + $0xb8] sm:$0xff] }
 0x15d   : > { %v1290_v21 = vadd.f32 %v1286_v40, %v1258_v20  ;;  %v2219_v61 = vpop.eup %2218  ;;  %v1533_v47 = vadd.f32 %v2949_v12, %v1501_v28  ;;  %v1657_v24 = vmul.f32 1.442695, %v1650_v30  ;;  %v1413_v0 = vmul.f32 %v2902_v1, %v2047_v15 }
 0x15e   : > { %v1412_v63 = vmul.f32 %v2829_v22, %v2046_v29  ;;  %v2959_v49 = vpop.eup %2220  ;;  %v1342_v59 = vadd.f32 %v2217_v56, %v1310_v31  ;;  %2236 = vpow2.f32 %v1561_v16  ;;  %v1350_v27 = vmul.f32 %v2217_v56, %v2040_v11  ;;  %v2055_v29 = vld [vmem:[%s2353_s22 + $0x110] sm:$0xff]  ;;  %v2054_v56 = vld [vmem:[%s2353_s22 + $0x108] sm:$0xff] }
 0x15f   : > { %v1322_v7 = vadd.f32 %v1318_v19, %v1290_v21  ;;  %v2223_v34 = vpop.eup %2222  ;;  %v1564_v35 = vadd.f32 %v2872_v2, %v1532_v13  ;;  %2238 = vpow2.f32 %v2875_v10  ;;  %v1417_v41 = vadd.f32 %v1413_v0, %v1385_v8  ;;  %v2025_v0 = vld [vmem:[%s2353_s22 + $0x20] sm:$0xff] }
 0x160   : > { %v1416_v30 = vadd.f32 %v1412_v63, %v1384_v14  ;;  %v1374_v1 = vadd.f32 %v2219_v61, %v1342_v59  ;;  %2240 = vpow2.f32 %v1593_v23  ;;  %v1382_v28 = vmul.f32 %v2258_v39, %v2219_v61  ;;  %v2259_v23 = vld [vmem:[%s2353_s22 + $0xd8] sm:$0xff] }
 0x161   : > { %v1354_v22 = vadd.f32 %v1350_v27, %v1322_v7  ;;  %v2225_v16 = vpop.eup %2224  ;;  %v1565_v26 = vadd.f32 %v2959_v49, %v1533_v47  ;;  %v1689_v32 = vmul.f32 1.442695, %v1682_v42  ;;  %v1445_v18 = vmul.f32 %v2913_v3, %v2051_v51  ;;  %v2260_v14 = vld [vmem:[%s2353_s22 + $0xf8] sm:$0xff]  ;;  %v2059_v27 = vld [vmem:[%s2353_s22 + $0x130] sm:$0xff]  ;;  %v2058_v51 = vld [vmem:[%s2353_s22 + $0x128] sm:$0xff] }
 0x162   : > { %v1444_v36 = vmul.f32 %v2837_v38, %v2050_v46  ;;  %v2969_v20 = vpop.eup %2226  ;;  %v1406_v10 = vadd.f32 %v2223_v34, %v1374_v1  ;;  %2242 = vpow2.f32 %v1625_v58  ;;  %v1414_v15 = vmul.f32 %v2259_v23, %v2223_v34  ;;  %v1215_v58 = vld [vmem:[%s2353_s22] sm:$0xff]  ;;  %v2261_v59 = vld [vmem:[%s2353_s22 + $0x118] sm:$0xff] }
 0x163   : > { %v1386_v40 = vadd.f32 %v1382_v28, %v1354_v22  ;;  %v2229_v13 = vpop.eup %2228  ;;  %v1596_v11 = vadd.f32 %v2882_v25, %v1564_v35  ;;  %2244 = vpow2.f32 %v2884_v60  ;;  %v1449_v3 = vadd.f32 %v1445_v18, %v1417_v41  ;;  %v2262_v22 = vld [vmem:[%s2353_s22 + $0x138] sm:$0xff]  ;;  %v2033_v18 = vld [vmem:[%s2353_s22 + $0x60] sm:$0xff] }
 0x164   : > { %v1448_v42 = vadd.f32 %v1444_v36, %v1416_v30  ;;  %v1438_v38 = vadd.f32 %v2225_v16, %v1406_v10  ;;  %2246 = vpow2.f32 %v1657_v24  ;;  %v1446_v31 = vmul.f32 %v2260_v14, %v2225_v16 }
 0x165   : > { %v1418_v8 = vadd.f32 %v1414_v15, %v1386_v40  ;;  %v2231_v21 = vpop.eup %2230  ;;  %v1595_v19 = vadd.f32 %v2794_v52, %v2916_v4  ;;  %v1597_v61 = vadd.f32 %v2969_v20, %v1565_v26  ;;  %v1477_v60 = vmul.f32 %v2924_v5, %v2055_v29  ;;  %v2029_v5 = vld [vmem:[%s2353_s22 + $0x40] sm:$0xff]  ;;  %v2062_v40 = vld [vmem:[%s2353_s22 + $0x148] sm:$0xff] }
 0x166   : > { %v1476_v47 = vmul.f32 %v2844_v62, %v2054_v56  ;;  %v1470_v63 = vadd.f32 %v2229_v13, %v1438_v38  ;;  %2248 = vpow2.f32 %v1689_v32  ;;  %v1478_v7 = vmul.f32 %v2261_v59, %v2229_v13  ;;  %v2263_v13 = vld [vmem:[%s2353_s22 + $0x158] sm:$0xff] }
 0x167   : > { %v1450_v24 = vadd.f32 %v1446_v31, %v1418_v8  ;;  %v2987_v46 = vpop.eup %2232  ;;  %v1628_v4 = vadd.f32 %v2888_v55, %v1596_v11  ;;  %v1481_v34 = vadd.f32 %v1477_v60, %v1449_v3  ;;  %v1219_v62 = vmul.f32 %v2692_v6, %v1215_v58  ;;  %v2063_v6 = vld [vmem:[%s2353_s22 + $0x150] sm:$0xff]  ;;  %v2037_v3 = vld [vmem:[%s2353_s22 + $0x80] sm:$0xff] }
 0x168   : > { %v1480_v35 = vadd.f32 %v1476_v47, %v1448_v42  ;;  %v2235_v41 = vpop.eup %2234  ;;  %v1502_v30 = vadd.f32 %v2231_v21, %v1470_v63  ;;  %v1510_v39 = vmul.f32 %v2262_v22, %v2231_v21  ;;  %v1251_v28 = vmul.f32 %v2697_v33, %v2025_v0  ;;  %v2066_v47 = vld [vmem:[%s2353_s22 + $0x168] sm:$0xff] }
 0x169   : > { %v1482_v1 = vadd.f32 %v1478_v7, %v1450_v24  ;;  %v1629_v16 = vadd.f32 %v2987_v46, %v1597_v61  ;;  %v1509_v26 = vmul.f32 %v2929_v37, %v2059_v27  ;;  %v1508_v32 = vmul.f32 %v2852_v48, %v2058_v51  ;;  %v3155_v63 = vld [vmem:[#allocation12_spill] sm:$0xff]  ;;  %v2264_v51 = vld [vmem:[%s2353_s22 + $0x178] sm:$0xff] }
 0x16a   : > { %v1534_v36 = vadd.f32 %v2235_v41, %v1502_v30  ;;  %v1255_v23 = vadd.f32 %v1251_v28, %v1219_v62  ;;  %v1283_v15 = vmul.f32 %v2706_v43, %v2029_v5  ;;  %v1627_v56 = vadd.f32 %v2799_v50, %v1595_v19  ;;  %v2041_v19 = vld [vmem:[%s2353_s22 + $0xa0] sm:$0xff]  ;;  %v3156_v7 = vld [vmem:[#allocation4_spill] sm:$0xff] }
 0x16b   : > { %v1514_v10 = vadd.f32 %v1510_v39, %v1482_v1  ;;  %v2237_v29 = vpop.eup %2236  ;;  %v1660_v33 = vadd.f32 %v2898_v17, %v1628_v4  ;;  %v1542_v11 = vmul.f32 %v2263_v13, %v2235_v41  ;;  %v1513_v37 = vadd.f32 %v1509_v26, %v1481_v34  ;;  %v2045_v34 = vld [vmem:[%s2353_s22 + $0xc0] sm:$0xff]  ;;  %v3157_v41 = vld [vmem:[#allocation13_spill] sm:$0xff] }
 0x16c   : > { %v3005_v48 = vpop.eup %2238  ;;  %v1566_v42 = vadd.f32 %v2237_v29, %v1534_v36  ;;  %v1512_v38 = vadd.f32 %v1508_v32, %v1480_v35  ;;  %v1287_v8 = vadd.f32 %v1283_v15, %v1255_v23  ;;  %v1315_v14 = vmul.f32 %v2718_v53, %v2033_v18  ;;  %v2265_v39 = vld [vmem:[%s2353_s22 + $0x170] sm:$0xff]  ;;  %v2049_v26 = vld [vmem:[%s2353_s22 + $0xe0] sm:$0xff]  ;;  %v2070_v36 = vld [vmem:[%s2353_s22 + $0x188] sm:$0xff] }
 0x16d   : > { %v2241_v43 = vpop.eup %2240  ;;  %v1661_v31 = vadd.f32 %v3005_v48, %v1629_v16  ;;  %v1541_v58 = vmul.f32 %v2949_v12, %v2063_v6  ;;  %v1540_v21 = vmul.f32 %v2866_v9, %v2062_v40  ;;  %v1546_v60 = vadd.f32 %v1542_v11, %v1514_v10  ;;  %v3158_v6 = vld [vmem:[#allocation14_spill] sm:$0xff]  ;;  %v3159_v15 = vld [vmem:[#allocation9_spill] sm:$0xff]  ;;  %v2053_v11 = vld [vmem:[%s2353_s22 + $0x100] sm:$0xff] }
 0x16e   : > { %v1598_v61 = vadd.f32 %v2241_v43, %v1566_v42  ;;  %v1319_v0 = vadd.f32 %v1315_v14, %v1287_v8  ;;  %v1347_v24 = vmul.f32 %v3155_v63, %v2037_v3  ;;  %v1659_v27 = vadd.f32 %v3156_v7, %v1627_v56  ;;  %v2266_v56 = vld [vmem:[%s2353_s22 + $0x198] sm:$0xff]  ;;  %v3160_v3 = vld [vmem:[#allocation15_spill] sm:$0xff] }
 0x16f   : > { %v2243_v59 = vpop.eup %2242  ;;  %v1692_v53 = vadd.f32 %v2908_v57, %v1660_v33  ;;  %v1574_v4 = vmul.f32 %v2264_v51, %v2237_v29  ;;  %v1545_v12 = vadd.f32 %v1541_v58, %v1513_v37  ;;  %v1544_v62 = vadd.f32 %v1540_v21, %v1512_v38  ;;  %v2267_v38 = vld [vmem:[%s2353_s22 + $0x190] sm:$0xff]  ;;  %v3161_v21 = vld [vmem:[#allocation16_spill] sm:$0xff]  ;;  %v2065_v51 = vld [vmem:[%s2353_s22 + $0x160] sm:$0xff] }
 0x170   : > { %v3018_v9 = vpop.eup %2244  ;;  %v1630_v35 = vadd.f32 %v2243_v59, %v1598_v61  ;;  %v1351_v5 = vadd.f32 %v1347_v24, %v1319_v0  ;;  %v1379_v30 = vmul.f32 %v3157_v41, %v2041_v19  ;;  %v1573_v28 = vmul.f32 %v2265_v39, %v2959_v49  ;;  %v2268_v0 = vld [vmem:[%s2353_s22 + $0x1b8] sm:$0xff]  ;;  %v2271_v39 = vld [vmem:[%s2353_s22 + $0x1d0] sm:$0xff] }
 0x171   : > { %v2247_v1 = vpop.eup %2246  ;;  %v1693_v22 = vadd.f32 %v3018_v9, %v1661_v31  ;;  %v1572_v16 = vmul.f32 %v2872_v2, %v2066_v47  ;;  %v1578_v18 = vadd.f32 %v1574_v4, %v1546_v60  ;;  %v1411_v40 = vmul.f32 %v3158_v6, %v2045_v34  ;;  %v2057_v31 = vld [vmem:[%s2353_s22 + $0x120] sm:$0xff]  ;;  %v2074_v60 = vld [vmem:[%s2353_s22 + $0x1a8] sm:$0xff]  ;;  %v2270_v41 = vld [vmem:[%s2353_s22 + $0x1d8] sm:$0xff] }
 0x172   : > { %v1662_v32 = vadd.f32 %v2247_v1, %v1630_v35  ;;  %v1383_v10 = vadd.f32 %v1379_v30, %v1351_v5  ;;  %v1691_v29 = vadd.f32 %v3159_v15, %v1659_v27  ;;  %2250 = vrcp.f32 %v1692_v53  ;;  %v2061_v47 = vld [vmem:[%s2353_s22 + $0x140] sm:$0xff]  ;;  %v2269_v27 = vld [vmem:[%s2353_s22 + $0x1b0] sm:$0xff]  ;;  %v2078_v5 = vld [vmem:[%s2353_s22 + $0x1c8] sm:$0xff] }
 0x173   : > { %v2249_v23 = vpop.eup %2248  ;;  %v1606_v33 = vmul.f32 %v2266_v56, %v2241_v43  ;;  %v1577_v13 = vadd.f32 %v1573_v28, %v1545_v12  ;;  %v1576_v2 = vadd.f32 %v1572_v16, %v1544_v62  ;;  %v1443_v42 = vmul.f32 %v3160_v3, %v2049_v26  ;;  %v2272_v6 = vld [vmem:[%s2353_s22 + $0x1f8] sm:$0xff] }
 0x174   : > { %v1694_v49 = vadd.f32 %v2249_v23, %v1662_v32  ;;  %v1415_v37 = vadd.f32 %v1411_v40, %v1383_v10  ;;  %2252 = vrcp.f32 %v1693_v22  ;;  %v1605_v8 = vmul.f32 %v2267_v38, %v2969_v20  ;;  %v2077_v10 = vld [vmem:[%s2353_s22 + $0x1c0] sm:$0xff] }
 0x175   : > { %v1604_v14 = vmul.f32 %v2882_v25, %v2070_v36  ;;  %v1610_v43 = vadd.f32 %v1606_v33, %v1578_v18  ;;  %v1475_v19 = vmul.f32 %v3161_v21, %v2053_v11  ;;  %v1638_v63 = vmul.f32 %v2268_v0, %v2243_v59  ;;  %v2069_v59 = vld [vmem:[%s2353_s22 + $0x180] sm:$0xff]  ;;  %v2082_v36 = vld [vmem:[%s2353_s22 + $0x1e8] sm:$0xff]  ;;  %v2273_v33 = vld [vmem:[%s2353_s22 + $0x1f0] sm:$0xff] }
 0x176   : > { %2254 = vrcp.f32 %v1694_v49  ;;  %v1447_v58 = vadd.f32 %v1443_v42, %v1415_v37  ;;  %v1609_v61 = vadd.f32 %v1605_v8, %v1577_v13  ;;  %v1507_v25 = vmul.f32 %v2761_v45, %v2057_v31  ;;  %v2081_v13 = vld [vmem:[%s2353_s22 + $0x1e0] sm:$0xff]  ;;  %v243_v21 = vld [vmem:[%s3109_s2 + $0x18] sm:$0xff] }
 0x177   : > { %2256 = vrcp.f32 %v1691_v29  ;;  %v1608_v20 = vadd.f32 %v1604_v14, %v1576_v2  ;;  %v1637_v53 = vmul.f32 %v2269_v27, %v2987_v46  ;;  %v1642_v4 = vadd.f32 %v1638_v63, %v1610_v43 }
 0x178   : > { %v1479_v24 = vadd.f32 %v1475_v19, %v1447_v58  ;;  %v1636_v12 = vmul.f32 %v2888_v55, %v2074_v60  ;;  %v1539_v35 = vmul.f32 %v2775_v44, %v2061_v47  ;;  %v1670_v45 = vmul.f32 %v2270_v41, %v2247_v1  ;;  %v2073_v55 = vld [vmem:[%s2353_s22 + $0x1a0] sm:$0xff]  ;;  %v242_v58 = vld [vmem:[%s3109_s2 + $0x10] sm:$0xff]  ;;  %s3088_s22 = scalar_lea.vmem %s3111_s4, %s2092_s19 }
 0x179   : > { %v1641_v62 = vadd.f32 %v1637_v53, %v1609_v61  ;;  %v1571_v46 = vmul.f32 %v2781_v54, %v2065_v51  ;;  %v1669_v28 = vmul.f32 %v2271_v39, %v3005_v48  ;;  %v1668_v44 = vmul.f32 %v2898_v17, %v2078_v5 }
 0x17a   : > { %v1511_v34 = vadd.f32 %v1507_v25, %v1479_v24  ;;  %v1640_v30 = vadd.f32 %v1636_v12, %v1608_v20  ;;  %v1674_v16 = vadd.f32 %v1670_v45, %v1642_v4  ;;  %v1603_v32 = vmul.f32 %v2794_v52, %v2069_v59 }
 0x17b   : > { %v1673_v18 = vadd.f32 %v1669_v28, %v1641_v62  ;;  %v1702_v40 = vmul.f32 %v2272_v6, %v2249_v23  ;;  %v1635_v56 = vmul.f32 %v2799_v50, %v2073_v55  ;;  %v1701_v48 = vmul.f32 %v2273_v33, %v3018_v9 }
 0x17c   : > { %v1543_v22 = vadd.f32 %v1539_v35, %v1511_v34  ;;  %v1672_v29 = vadd.f32 %v1668_v44, %v1640_v30  ;;  %v1700_v17 = vmul.f32 %v2908_v57, %v2082_v36  ;;  %v1667_v52 = vmul.f32 %v3156_v7, %v2077_v10  ;;  %v240_v57 = vld [vmem:[%s3109_s2] sm:$0xff] }
 0x17d   : > { %v1706_v49 = vadd.f32 %v1702_v40, %v1674_v16  ;;  %v1705_v3 = vadd.f32 %v1701_v48, %v1673_v18  ;;  %v1699_v14 = vmul.f32 %v3159_v15, %v2081_v13  ;;  %v3162_v7 = vmov 0.0   ;;  %v241_v15 = vld [vmem:[%s3109_s2 + $0x8] sm:$0xff] }
 0x17e   : > { %v1575_v26 = vadd.f32 %v1571_v46, %v1543_v22  ;;  %v1704_v23 = vadd.f32 %v1700_v17, %v1672_v29 }
 0x17f   : > { %v2251_v1 = vpop.eup %2250 }
 0x180   : > { %v1607_v54 = vadd.f32 %v1603_v32, %v1575_v26  ;;  %v1712_v31 = vmul.f32 %v2251_v1, %v1704_v23 }
 0x181   : > { %v2253_v11 = vpop.eup %2252 }
 0x182   : > { %v1639_v2 = vadd.f32 %v1635_v56, %v1607_v54  ;;  %v1713_v50 = vmul.f32 %v2253_v11, %v1705_v3 }
 0x183   : > { %v2255_v37 = vpop.eup %2254 }
 0x184   : > { %v2257_v42 = vpop.eup %2256  ;;  %v1714_v38 = vmul.f32 %v2255_v37, %v1706_v49  ;;  %v1671_v8 = vadd.f32 %v1667_v52, %v1639_v2 }
 0x186   : > { %1775 = vmatprep.subr.mxu0 %v1714_v38  ;;  %v1703_v9 = vadd.f32 %v1699_v14, %v1671_v8 }
 0x187   : > { %1776 = vmatpush1.msra.mxu0 %v1713_v50 }
 0x188   : > { %1777 = vmatprep.subr.mxu0 %v1712_v31  ;;  %v1711_v43 = vmul.f32 %v2257_v42, %v1703_v9 }
 0x18a   : > { %1778 = vmatpush1.msra.mxu0 %v1711_v43 }
 0x18b   : > { %2085 = vmatmul.mubr.msk.f32.vlgmr.msra.gmra.mxu0 %vm259_vm0, %v240_v57 }
 0x18c   : > { %1817 = vmatprep.mubr.f32.mxu0 %v3162_v7 }
 0x18f   : > { %2086 = vmatmul.mubr.msk.f32.gmra.mxu0 %vm259_vm0, %v241_v15 }
 0x190   : > { %1823 = vmatprep.mubr.f32.mxu0 %v3162_v7 }
 0x193   : > { %2087 = vmatmul.mubr.msk.f32.gmra.mxu0 %vm259_vm0, %v242_v58 }
 0x194   : > { %1829 = vmatprep.mubr.f32.mxu0 %v3162_v7 }
 0x197   : > { %2088 = vmatmul.mubr.msk.f32.gmra.mxu0 %vm259_vm0, %v243_v21  ;;  %v1718_v19 = vpop.permute.xlu0 %1717  ;;  %v1728_v51 = vpop.permute.xlu1 %1727 }
 0x19b   : > { %v1723_v0 = vpop.permute.xlu0 %1722  ;;  %v1733_v30 = vpop.permute.xlu1 %1732 }
 0x24b   : > { %v1813_v61 = vpop.f32.mrf.mxu0 }
 0x24c   : > { %v1814_v60 = vadd.f32 %v1813_v61, %v1718_v19 }
 0x24d   : > { %v1815_v47 = vpop.f32.mrf.mxu0 }
 0x24e   : > { %v1816_v63 = vadd.f32 %v1815_v47, %v1718_v19  ;;  %v1836_v20 = vmax.f32 %v1814_v60, 0.0 }
 0x24f   : > { %v1819_v24 = vpop.f32.mrf.mxu0 }
 0x250   : > { %v1837_v25 = vmax.f32 %v1816_v63, 0.0  ;;  %1844 = vst [vmem:[%s3088_s22] sm:$0xff] %v1836_v20  ;;  %v1820_v27 = vadd.f32 %v1819_v24, %v1723_v0 }
 0x251   : > { %v1821_v53 = vpop.f32.mrf.mxu0 }
 0x252   : > { %1845 = vst [vmem:[%s3088_s22 + $0x8] sm:$0xff] %v1837_v25  ;;  %v1822_v4 = vadd.f32 %v1821_v53, %v1723_v0  ;;  %v1838_v12 = vmax.f32 %v1820_v27, 0.0 }
 0x253   : > { %v1825_v34 = vpop.f32.mrf.mxu0 }
 0x254   : > { %v1839_v35 = vmax.f32 %v1822_v4, 0.0  ;;  %1846 = vst [vmem:[%s3088_s22 + $0x10] sm:$0xff] %v1838_v12  ;;  %v1826_v62 = vadd.f32 %v1825_v34, %v1728_v51 }
 0x255   : > { %v1827_v5 = vpop.f32.mrf.mxu0 }
 0x256   : > { %1847 = vst [vmem:[%s3088_s22 + $0x18] sm:$0xff] %v1839_v35  ;;  %v1840_v59 = vmax.f32 %v1826_v62, 0.0  ;;  %v1828_v41 = vadd.f32 %v1827_v5, %v1728_v51 }
 0x257   : > { %v1831_v45 = vpop.f32.mrf.mxu0 }
 0x258   : > { %1848 = vst [vmem:[%s3088_s22 + $0x20] sm:$0xff] %v1840_v59  ;;  %v1841_v22 = vmax.f32 %v1828_v41, 0.0  ;;  %v1832_v46 = vadd.f32 %v1831_v45, %v1733_v30 }
 0x259   : > { %v1833_v39 = vpop.f32.mrf.mxu0 }
 0x25a   : > { %1849 = vst [vmem:[%s3088_s22 + $0x28] sm:$0xff] %v1841_v22  ;;  %v1842_v28 = vmax.f32 %v1832_v46, 0.0  ;;  %v1834_v55 = vadd.f32 %v1833_v39, %v1733_v30 }
 0x25c   : > { %1850 = vst [vmem:[%s3088_s22 + $0x30] sm:$0xff] %v1842_v28  ;;  %v1843_v16 = vmax.f32 %v1834_v55, 0.0 }
 0x25e   : > { %1851 = vst [vmem:[%s3088_s22 + $0x38] sm:$0xff] %v1843_v16 }
 0x25f PF: > { %s14_s17 = sadd.s32 1, %s2296_s17   ;;  %s3163_s15 = smov %s2292_s16 }
 0x260   : > { %p11_p5 = scmp.ge.s32.totalorder %s14_s17, 4   ;;  %s3164_s16 = smov %s3166_s18 }
 0x262   :  { %13 = sbr.rel (!%p11_p5) target bundleno = 2 (0x2), region = 96 }

</bundles_post_ra>
